<compile_context>
chip_gen: v6e
topology: v6e:2x2x1
jax: 0.10.0
libtpu: 0.0.40
codegen_flags: <defaults>
</compile_context>

<pallas_src>
import jax
import jax.numpy as jnp
from jax.experimental import pallas as pl
from jax.experimental.pallas import tpu as pltpu

IMAGE_SIZE = 28
IN_DIM = IMAGE_SIZE * IMAGE_SIZE  # 784
H_DIM = 400
H_PAD = 512                       # h_dim padded to a multiple of 128 lanes
Z_DIM = 20
ZP = 128                          # z_dim padded to one full lane tile


def _round_up(x, m):
    return (x + m - 1) // m * m


def _vmem_capacity_bytes():
    """Physical VMEM per TensorCore; conservative fallback if query fails."""
    try:
        info = pltpu.get_tpu_info()
        for attr in ("vmem_capacity_bytes", "vmem_size_bytes", "vmem_bytes"):
            v = getattr(info, attr, None)
            if v:
                return int(v)
    except Exception:
        pass
    return 64 * 1024 * 1024   # assume v7x-class (smallest) VMEM


def _pick_tm(batch, vmem_bytes, tm_hint):
    """Batch-tile rows: big tiles on 128-MiB parts, capped at 512 on v7x."""
    cap = 1024 if vmem_bytes >= 96 * 1024 * 1024 else 512
    if tm_hint is not None:
        cap = max(8, min(cap, _round_up(tm_hint, 8)))
    tm = min(cap, _round_up(batch, 8))
    # Prefer >= 2 grid steps so the 'parallel' batch axis can be sharded across
    # v7x's 2 TensorCores and DMA/compute overlap kicks in on 1-TC parts.
    if batch >= 16 and pl.cdiv(batch, tm) < 2:
        tm = min(tm, _round_up(pl.cdiv(batch, 2), 8))
    return tm


def _vae_kernel(x_ref, eps_ref,
                w1_ref, b1_ref, w23_ref, b23_ref,
                w4_ref, b4_ref, w5_ref, b5_ref,
                xr_ref, mulv_ref):
    # encode: h = relu(x @ W1 + b1)
    # x arrives as f32; cast to bf16 in-kernel (VPU cast hidden under MXU work).
    x = x_ref[...].astype(jnp.bfloat16)
    h = jnp.dot(x, w1_ref[...], preferred_element_type=jnp.float32)
    h = jnp.maximum(h + b1_ref[...], 0.0)

    # fused fc2/fc3 head: one matmul -> [mu_pad || log_var_pad]  (TM, 2*ZP)
    out23 = jnp.dot(h.astype(jnp.bfloat16), w23_ref[...],
                    preferred_element_type=jnp.float32) + b23_ref[...]
    mu = out23[:, :ZP]          # 128-lane-aligned slices: no lane shuffles
    log_var = out23[:, ZP:]

    # reparameterize: z = mu + eps * exp(log_var / 2)
    # padded lanes: mu = log_var = eps = 0  ->  z = 0 there
    z = mu + eps_ref[...] * jnp.exp(log_var * 0.5)

    # decode: h2 = relu(z @ W4 + b4); x_reconst = sigmoid(h2 @ W5 + b5)
    h2 = jnp.dot(z.astype(jnp.bfloat16), w4_ref[...],
                 preferred_element_type=jnp.float32)
    h2 = jnp.maximum(h2 + b4_ref[...], 0.0)
    logits = jnp.dot(h2.astype(jnp.bfloat16), w5_ref[...],
                     preferred_element_type=jnp.float32) + b5_ref[...]

    # sigmoid via EUP exp + approx reciprocal (EUP slot is otherwise idle).
    xr = pl.reciprocal(1.0 + jnp.exp(-logits), approx=True)
    xr_ref[...] = xr.astype(xr_ref.dtype)
    mulv_ref[...] = out23.astype(mulv_ref.dtype)


def init_params(key):
    """Deterministic parameter init (PyTorch nn.Linear-style uniform bounds).

    Weights stored as (in, out) f32; packed / padded / cast to bf16 for the
    kernel by _pack_params.
    """
    params = {}
    dims = [
        ("fc1", IN_DIM, H_DIM),
        ("fc2", H_DIM, Z_DIM),
        ("fc3", H_DIM, Z_DIM),
        ("fc4", Z_DIM, H_DIM),
        ("fc5", H_DIM, IN_DIM),
    ]
    for name, fan_in, fan_out in dims:
        key, kw, kb = jax.random.split(key, 3)
        bound = 1.0 / jnp.sqrt(fan_in)
        params[name + "_w"] = jax.random.uniform(
            kw, (fan_in, fan_out), jnp.float32, -bound, bound)
        params[name + "_b"] = jax.random.uniform(
            kb, (1, fan_out), jnp.float32, -bound, bound)
    return params


def _pack_params(params):
    """Kernel-ready weights: bf16, fc2/fc3 fused, Z padded to 128, H to 512."""
    bf16, f32 = jnp.bfloat16, jnp.float32
    pad_h_cols = ((0, 0), (0, H_PAD - H_DIM))
    pad_h_rows = ((0, H_PAD - H_DIM), (0, 0))
    pad_z_cols = ((0, 0), (0, ZP - Z_DIM))

    w1 = jnp.pad(params["fc1_w"], pad_h_cols).astype(bf16)              # (784, 512)
    b1 = jnp.pad(params["fc1_b"], pad_h_cols).astype(f32)               # (1, 512)

    w23 = jnp.concatenate(
        [jnp.pad(params["fc2_w"], pad_z_cols),
         jnp.pad(params["fc3_w"], pad_z_cols)], axis=1)                  # (400, 256)
    w23 = jnp.pad(w23, pad_h_rows).astype(bf16)                          # (512, 256)
    b23 = jnp.concatenate(
        [jnp.pad(params["fc2_b"], pad_z_cols),
         jnp.pad(params["fc3_b"], pad_z_cols)], axis=1).astype(f32)      # (1, 256)

    w4 = jnp.pad(params["fc4_w"],
                 ((0, ZP - Z_DIM), (0, H_PAD - H_DIM))).astype(bf16)     # (128, 512)
    b4 = jnp.pad(params["fc4_b"], pad_h_cols).astype(f32)                # (1, 512)

    w5 = jnp.pad(params["fc5_w"], pad_h_rows).astype(bf16)               # (512, 784)
    b5 = params["fc5_b"].astype(f32)                                     # (1, 784)

    return dict(w1=w1, b1=b1, w23=w23, b23=b23, w4=w4, b4=b4, w5=w5, b5=b5)


def vae_forward(x_nchw, eps, params, *, tm=None, out_dtype=jnp.bfloat16):
    """x_nchw: (B, 1, 28, 28) float32. eps: (B, Z_DIM) float32 noise.

    Returns (x_reconst (B, 784) out_dtype, mu (B, 20) f32, log_var (B, 20) f32).
    """
    B = x_nchw.shape[0]
    x = x_nchw.reshape(B, IN_DIM)                                # f32, cast in-kernel
    eps = jnp.pad(eps.astype(jnp.float32), ((0, 0), (0, ZP - Z_DIM)))  # (B, ZP), tiny

    p = _pack_params(params)
    TM = _pick_tm(B, _vmem_capacity_bytes(), tm)
    grid = (pl.cdiv(B, TM),)        # ragged last block handled by Pallas masking

    def row_spec(feat):
        return pl.BlockSpec((TM, feat), lambda i: (i, 0))

    def const_spec(arr):  # full array, same block every step -> stays in VMEM
        return pl.BlockSpec(arr.shape, lambda i: (0, 0))

    inputs = (x, eps,
              p["w1"], p["b1"], p["w23"], p["b23"],
              p["w4"], p["b4"], p["w5"], p["b5"])
    in_specs = [row_spec(IN_DIM), row_spec(ZP)] + [const_spec(a) for a in inputs[2:]]

    out_shape = (jax.ShapeDtypeStruct((B, IN_DIM), out_dtype),      # x_reconst
                 jax.ShapeDtypeStruct((B, 2 * ZP), jnp.float32))    # mu || log_var
    out_specs = (row_spec(IN_DIM), row_spec(2 * ZP))

    flops = 2 * B * (IN_DIM * H_PAD + H_PAD * 2 * ZP + ZP * H_PAD + H_PAD * IN_DIM)
    transcendentals = B * (ZP + IN_DIM)                             # exp + sigmoid
    bytes_accessed = sum(int(a.size) * a.dtype.itemsize for a in inputs)
    bytes_accessed += B * IN_DIM * jnp.dtype(out_dtype).itemsize + B * 2 * ZP * 4

    xr, mulv = pl.pallas_call(
        _vae_kernel,
        out_shape=out_shape,
        grid=grid,
        in_specs=in_specs,
        out_specs=out_specs,
        compiler_params=pltpu.CompilerParams(
            dimension_semantics=("parallel",),
            vmem_limit_bytes=48 * 1024 * 1024),     # safe on v7x's 64 MiB, ample on v5e/v6e
        cost_estimate=pl.CostEstimate(flops=flops,
                                      transcendentals=transcendentals,
                                      bytes_accessed=bytes_accessed),
    )(*inputs)

    mu = mulv[:, :Z_DIM]                   # tiny (B, 256) slab; slices are cheap
    log_var = mulv[:, ZP:ZP + Z_DIM]
    return xr, mu, log_var


def vae_forward_ref(x_nchw, eps, params):
    """Pure-JAX reference using the same bf16-matmul / f32-accumulate math."""
    B = x_nchw.shape[0]
    x = x_nchw.reshape(B, IN_DIM)
    bf16 = jnp.bfloat16

    def dot(a, w):
        return jnp.dot(a.astype(bf16), w.astype(bf16),
                       preferred_element_type=jnp.float32)

    h = jax.nn.relu(dot(x, params["fc1_w"]) + params["fc1_b"])
    mu = dot(h, params["fc2_w"]) + params["fc2_b"]
    log_var = dot(h, params["fc3_w"]) + params["fc3_b"]
    z = mu + eps * jnp.exp(log_var / 2)
    h2 = jax.nn.relu(dot(z, params["fc4_w"]) + params["fc4_b"])
    x_reconst = jax.nn.sigmoid(dot(h2, params["fc5_w"]) + params["fc5_b"])
    return x_reconst, mu, log_var


if __name__ == "__main__":
    key = jax.random.PRNGKey(0)
    kp, kx, keps = jax.random.split(key, 3)

    params = init_params(kp)

    B = 4
    x = jax.random.uniform(kx, (B, 1, IMAGE_SIZE, IMAGE_SIZE), jnp.float32)
    # TODO(synk): torch.randn_like inside reparameterize is nondeterministic;
    # eps is passed in explicitly (generated deterministically outside).
    eps = jax.random.normal(keps, (B, Z_DIM), jnp.float32)

    x_reconst, mu, log_var = vae_forward(x, eps, params)
    jax.block_until_ready((x_reconst, mu, log_var))

    assert x_reconst.shape == (B, IN_DIM)
    assert mu.shape == (B, Z_DIM) and log_var.shape == (B, Z_DIM)

    # sanity check against bf16-matmul JAX reference (x_reconst is bf16 + approx
    # reciprocal sigmoid, so use a slightly looser tolerance there)
    xr_ref, mu_ref, lv_ref = vae_forward_ref(x, eps, params)
    assert jnp.allclose(x_reconst.astype(jnp.float32), xr_ref, atol=2e-2), \
        "x_reconst mismatch"
    assert jnp.allclose(mu, mu_ref, atol=5e-3), "mu mismatch"
    assert jnp.allclose(log_var, lv_ref, atol=5e-3), "log_var mismatch"

    print("KERNEL_OK")
</pallas_src>

<mosaic_0001>
module attributes {stable_mosaic.version = 11 : i64} {
  func.func @_vae_kernel(%arg0: i32, %arg1: memref<8x784xf32, #tpu.memory_space<vmem>>, %arg2: memref<8x128xf32, #tpu.memory_space<vmem>>, %arg3: memref<784x512xbf16, #tpu.memory_space<vmem>>, %arg4: memref<1x512xf32, #tpu.memory_space<vmem>>, %arg5: memref<512x256xbf16, #tpu.memory_space<vmem>>, %arg6: memref<1x256xf32, #tpu.memory_space<vmem>>, %arg7: memref<128x512xbf16, #tpu.memory_space<vmem>>, %arg8: memref<1x512xf32, #tpu.memory_space<vmem>>, %arg9: memref<512x784xbf16, #tpu.memory_space<vmem>>, %arg10: memref<1x784xf32, #tpu.memory_space<vmem>>, %arg11: memref<8x784xbf16, #tpu.memory_space<vmem>>, %arg12: memref<8x256xf32, #tpu.memory_space<vmem>>) attributes {dimension_semantics = [#tpu.dimension_semantics<parallel>], iteration_bounds = array<i64: 1>, scalar_prefetch = 0 : i64, scratch_operands = 0 : i64, tpu.core_type = #tpu.core_type<tc>, window_params = [{transform_indices = @transform_0, window_bounds = array<i64: 8, 784>}, {transform_indices = @transform_1, window_bounds = array<i64: 8, 128>}, {pipeline_mode = #tpu.pipeline_mode<synchronous>, transform_indices = @transform_2, window_bounds = array<i64: 784, 512>}, {pipeline_mode = #tpu.pipeline_mode<synchronous>, transform_indices = @transform_3, window_bounds = array<i64: 1, 512>}, {pipeline_mode = #tpu.pipeline_mode<synchronous>, transform_indices = @transform_4, window_bounds = array<i64: 512, 256>}, {pipeline_mode = #tpu.pipeline_mode<synchronous>, transform_indices = @transform_5, window_bounds = array<i64: 1, 256>}, {pipeline_mode = #tpu.pipeline_mode<synchronous>, transform_indices = @transform_6, window_bounds = array<i64: 128, 512>}, {pipeline_mode = #tpu.pipeline_mode<synchronous>, transform_indices = @transform_7, window_bounds = array<i64: 1, 512>}, {pipeline_mode = #tpu.pipeline_mode<synchronous>, transform_indices = @transform_8, window_bounds = array<i64: 512, 784>}, {pipeline_mode = #tpu.pipeline_mode<synchronous>, transform_indices = @transform_9, window_bounds = array<i64: 1, 784>}, {transform_indices = @transform_10, window_bounds = array<i64: 8, 784>}, {transform_indices = @transform_11, window_bounds = array<i64: 8, 256>}]} {
    %c0 = arith.constant 0 : index
    %c0_0 = arith.constant 0 : index
    %0 = vector.load %arg1[%c0, %c0_0] : memref<8x784xf32, #tpu.memory_space<vmem>>, vector<8x784xf32>
    %1 = arith.truncf %0 : vector<8x784xf32> to vector<8x784xbf16>
    %c0_1 = arith.constant 0 : index
    %c0_2 = arith.constant 0 : index
    %2 = vector.load %arg3[%c0_1, %c0_2] : memref<784x512xbf16, #tpu.memory_space<vmem>>, vector<784x512xbf16>
    %cst = arith.constant dense<0.000000e+00> : vector<8x512xf32>
    %3 = tpu.matmul %1, %2, %cst {dimension_numbers = #tpu.dot_dimension_numbers<[1], [0], [0], [1], [0, 0, 1, 1], [], []>} : vector<8x784xbf16>, vector<784x512xbf16>, vector<8x512xf32> -> vector<8x512xf32>
    %c0_3 = arith.constant 0 : index
    %c0_4 = arith.constant 0 : index
    %4 = vector.load %arg4[%c0_3, %c0_4] : memref<1x512xf32, #tpu.memory_space<vmem>>, vector<1x512xf32>
    %5 = vector.broadcast %4 : vector<1x512xf32> to vector<8x512xf32>
    %6 = arith.addf %3, %5 : vector<8x512xf32>
    %cst_5 = arith.constant 0.000000e+00 : f32
    %7 = vector.broadcast %cst_5 : f32 to vector<8x512xf32>
    %8 = arith.maximumf %6, %7 : vector<8x512xf32>
    %9 = arith.truncf %8 : vector<8x512xf32> to vector<8x512xbf16>
    %c0_6 = arith.constant 0 : index
    %c0_7 = arith.constant 0 : index
    %10 = vector.load %arg5[%c0_6, %c0_7] : memref<512x256xbf16, #tpu.memory_space<vmem>>, vector<512x256xbf16>
    %cst_8 = arith.constant dense<0.000000e+00> : vector<8x256xf32>
    %11 = tpu.matmul %9, %10, %cst_8 {dimension_numbers = #tpu.dot_dimension_numbers<[1], [0], [0], [1], [0, 0, 1, 1], [], []>} : vector<8x512xbf16>, vector<512x256xbf16>, vector<8x256xf32> -> vector<8x256xf32>
    %c0_9 = arith.constant 0 : index
    %c0_10 = arith.constant 0 : index
    %12 = vector.load %arg6[%c0_9, %c0_10] : memref<1x256xf32, #tpu.memory_space<vmem>>, vector<1x256xf32>
    %13 = vector.broadcast %12 : vector<1x256xf32> to vector<8x256xf32>
    %14 = arith.addf %11, %13 : vector<8x256xf32>
    %15 = vector.extract_strided_slice %14 {offsets = [0, 0], sizes = [8, 128], strides = [1, 1]} : vector<8x256xf32> to vector<8x128xf32>
    %16 = vector.extract_strided_slice %14 {offsets = [0, 128], sizes = [8, 128], strides = [1, 1]} : vector<8x256xf32> to vector<8x128xf32>
    %c0_11 = arith.constant 0 : index
    %c0_12 = arith.constant 0 : index
    %17 = vector.load %arg2[%c0_11, %c0_12] : memref<8x128xf32, #tpu.memory_space<vmem>>, vector<8x128xf32>
    %cst_13 = arith.constant 5.000000e-01 : f32
    %18 = vector.broadcast %cst_13 : f32 to vector<8x128xf32>
    %19 = arith.mulf %16, %18 : vector<8x128xf32>
    %20 = math.exp %19 : vector<8x128xf32>
    %21 = arith.mulf %17, %20 : vector<8x128xf32>
    %22 = arith.addf %15, %21 : vector<8x128xf32>
    %23 = arith.truncf %22 : vector<8x128xf32> to vector<8x128xbf16>
    %c0_14 = arith.constant 0 : index
    %c0_15 = arith.constant 0 : index
    %24 = vector.load %arg7[%c0_14, %c0_15] : memref<128x512xbf16, #tpu.memory_space<vmem>>, vector<128x512xbf16>
    %cst_16 = arith.constant dense<0.000000e+00> : vector<8x512xf32>
    %25 = tpu.matmul %23, %24, %cst_16 {dimension_numbers = #tpu.dot_dimension_numbers<[1], [0], [0], [1], [0, 0, 1, 1], [], []>} : vector<8x128xbf16>, vector<128x512xbf16>, vector<8x512xf32> -> vector<8x512xf32>
    %c0_17 = arith.constant 0 : index
    %c0_18 = arith.constant 0 : index
    %26 = vector.load %arg8[%c0_17, %c0_18] : memref<1x512xf32, #tpu.memory_space<vmem>>, vector<1x512xf32>
    %27 = vector.broadcast %26 : vector<1x512xf32> to vector<8x512xf32>
    %28 = arith.addf %25, %27 : vector<8x512xf32>
    %cst_19 = arith.constant 0.000000e+00 : f32
    %29 = vector.broadcast %cst_19 : f32 to vector<8x512xf32>
    %30 = arith.maximumf %28, %29 : vector<8x512xf32>
    %31 = arith.truncf %30 : vector<8x512xf32> to vector<8x512xbf16>
    %c0_20 = arith.constant 0 : index
    %c0_21 = arith.constant 0 : index
    %32 = vector.load %arg9[%c0_20, %c0_21] : memref<512x784xbf16, #tpu.memory_space<vmem>>, vector<512x784xbf16>
    %cst_22 = arith.constant dense<0.000000e+00> : vector<8x784xf32>
    %33 = tpu.matmul %31, %32, %cst_22 {dimension_numbers = #tpu.dot_dimension_numbers<[1], [0], [0], [1], [0, 0, 1, 1], [], []>} : vector<8x512xbf16>, vector<512x784xbf16>, vector<8x784xf32> -> vector<8x784xf32>
    %c0_23 = arith.constant 0 : index
    %c0_24 = arith.constant 0 : index
    %34 = vector.load %arg10[%c0_23, %c0_24] : memref<1x784xf32, #tpu.memory_space<vmem>>, vector<1x784xf32>
    %35 = vector.broadcast %34 : vector<1x784xf32> to vector<8x784xf32>
    %36 = arith.addf %33, %35 : vector<8x784xf32>
    %cst_25 = arith.constant 0.000000e+00 : f32
    %37 = vector.broadcast %cst_25 : f32 to vector<8x784xf32>
    %38 = arith.subf %37, %36 : vector<8x784xf32>
    %39 = math.exp %38 : vector<8x784xf32>
    %cst_26 = arith.constant 1.000000e+00 : f32
    %40 = vector.broadcast %cst_26 : f32 to vector<8x784xf32>
    %41 = arith.addf %40, %39 : vector<8x784xf32>
    %42 = tpu.reciprocal %41 {approx = true} : vector<8x784xf32> -> vector<8x784xf32>
    %43 = arith.truncf %42 : vector<8x784xf32> to vector<8x784xbf16>
    %c0_27 = arith.constant 0 : index
    %c0_28 = arith.constant 0 : index
    %44 = vector.load %arg11[%c0_27, %c0_28] : memref<8x784xbf16, #tpu.memory_space<vmem>>, vector<8x784xbf16>
    tpu.vector_store %arg11[%c0_27, %c0_28], %43 {strides = array<i32>} : memref<8x784xbf16, #tpu.memory_space<vmem>>, vector<8x784xbf16>,
    %c0_29 = arith.constant 0 : index
    %c0_30 = arith.constant 0 : index
    %45 = vector.load %arg12[%c0_29, %c0_30] : memref<8x256xf32, #tpu.memory_space<vmem>>, vector<8x256xf32>
    tpu.vector_store %arg12[%c0_29, %c0_30], %14 {strides = array<i32>} : memref<8x256xf32, #tpu.memory_space<vmem>>, vector<8x256xf32>,
    return
  }
  func.func @transform_0(%arg0: i32) -> (i32, i32) {
    %c0_i32 = arith.constant 0 : i32
    %c0_i32_0 = arith.constant 0 : i32
    return %arg0, %c0_i32 : i32, i32
  }
  func.func @transform_1(%arg0: i32) -> (i32, i32) {
    %c0_i32 = arith.constant 0 : i32
    %c0_i32_0 = arith.constant 0 : i32
    return %arg0, %c0_i32 : i32, i32
  }
  func.func @transform_2(%arg0: i32) -> (i32, i32) {
    %c0_i32 = arith.constant 0 : i32
    %c0_i32_0 = arith.constant 0 : i32
    %c0_i32_1 = arith.constant 0 : i32
    return %c0_i32, %c0_i32_0 : i32, i32
  }
  func.func @transform_3(%arg0: i32) -> (i32, i32) {
    %c0_i32 = arith.constant 0 : i32
    %c0_i32_0 = arith.constant 0 : i32
    %c0_i32_1 = arith.constant 0 : i32
    return %c0_i32, %c0_i32_0 : i32, i32
  }
  func.func @transform_4(%arg0: i32) -> (i32, i32) {
    %c0_i32 = arith.constant 0 : i32
    %c0_i32_0 = arith.constant 0 : i32
    %c0_i32_1 = arith.constant 0 : i32
    return %c0_i32, %c0_i32_0 : i32, i32
  }
  func.func @transform_5(%arg0: i32) -> (i32, i32) {
    %c0_i32 = arith.constant 0 : i32
    %c0_i32_0 = arith.constant 0 : i32
    %c0_i32_1 = arith.constant 0 : i32
    return %c0_i32, %c0_i32_0 : i32, i32
  }
  func.func @transform_6(%arg0: i32) -> (i32, i32) {
    %c0_i32 = arith.constant 0 : i32
    %c0_i32_0 = arith.constant 0 : i32
    %c0_i32_1 = arith.constant 0 : i32
    return %c0_i32, %c0_i32_0 : i32, i32
  }
  func.func @transform_7(%arg0: i32) -> (i32, i32) {
    %c0_i32 = arith.constant 0 : i32
    %c0_i32_0 = arith.constant 0 : i32
    %c0_i32_1 = arith.constant 0 : i32
    return %c0_i32, %c0_i32_0 : i32, i32
  }
  func.func @transform_8(%arg0: i32) -> (i32, i32) {
    %c0_i32 = arith.constant 0 : i32
    %c0_i32_0 = arith.constant 0 : i32
    %c0_i32_1 = arith.constant 0 : i32
    return %c0_i32, %c0_i32_0 : i32, i32
  }
  func.func @transform_9(%arg0: i32) -> (i32, i32) {
    %c0_i32 = arith.constant 0 : i32
    %c0_i32_0 = arith.constant 0 : i32
    %c0_i32_1 = arith.constant 0 : i32
    return %c0_i32, %c0_i32_0 : i32, i32
  }
  func.func @transform_10(%arg0: i32) -> (i32, i32) {
    %c0_i32 = arith.constant 0 : i32
    %c0_i32_0 = arith.constant 0 : i32
    return %arg0, %c0_i32 : i32, i32
  }
  func.func @transform_11(%arg0: i32) -> (i32, i32) {
    %c0_i32 = arith.constant 0 : i32
    %c0_i32_0 = arith.constant 0 : i32
    return %arg0, %c0_i32 : i32, i32
  }
}

</mosaic_0001>

<bundles_post_ra>
// kernel: tpu_custom_call.1
= control target key start
LH: loop header
LB: loop body
LE: loop exit
PB: predicated region body
PF: predicated region fallthrough
CT: control target
= control target key end

     0   :  { %17 = vsyncpa [#allocation3], 0  ;;  %s7490_s0 = inlined_call_operand.vmem [shape: f32[4,784], index: 0, kind: input, shape index: {}]   ;;  %s7491_s1 = inlined_call_operand.vmem [shape: f32[4,128], index: 1, kind: input, shape index: {}]   ;;  %s7492_s2 = inlined_call_operand.vmem [shape: bf16[784,512], index: 2, kind: input, shape index: {}]   ;;  %s7493_s3 = inlined_call_operand.vmem [shape: f32[1,512], index: 3, kind: input, shape index: {}]   ;;  %s7494_s4 = inlined_call_operand.vmem [shape: bf16[512,256], index: 4, kind: input, shape index: {}]   ;;  %s7495_s5 = inlined_call_operand.vmem [shape: f32[1,256], index: 5, kind: input, shape index: {}]   ;;  %s7496_s6 = inlined_call_operand.vmem [shape: bf16[128,512], index: 6, kind: input, shape index: {}]   ;;  %s7497_s7 = inlined_call_operand.vmem [shape: f32[1,512], index: 7, kind: input, shape index: {}]   ;;  %s7498_s8 = inlined_call_operand.vmem [shape: bf16[512,784], index: 8, kind: input, shape index: {}]   ;;  %s7499_s9 = inlined_call_operand.vmem [shape: f32[1,784], index: 9, kind: input, shape index: {}]   ;;  %s7500_s10 = inlined_call_operand.hbm [shape: bf16[4,784], index: 10, kind: output, shape index: {0}]   ;;  %s7501_s11 = inlined_call_operand.hbm [shape: f32[4,256], index: 11, kind: output, shape index: {1}]  }
   0x1   :  { %18 = vsyncpa [#allocation5], 0  ;;  %v4885_v0 = vld [vmem:[%s7492_s2 + $0xe4] ss:$16 sps:$4 sm:$0xff]   ;;  %v4889_v2 = vld [vmem:[%s7492_s2 + $0xe0] ss:$16 sps:$4 sm:$0xff]  }
   0x2   :  { %v4887_v1 = vld [vmem:[%s7492_s2 + $0x2e4] ss:$16 sps:$4 sm:$0xff]   ;;  %v4890_v3 = vld [vmem:[%s7492_s2 + $0x2e0] ss:$16 sps:$4 sm:$0xff]   ;;  %1279 = vmatprep.subr.bf16.mxu0 %v4885_v0  ;;  %v4986_v50 = vld [vmem:[%s7490_s0 + $0xc] ss:$28 sps:$4 sm:$0xff]  }
   0x3   :  { %v4891_v4 = vld [vmem:[%s7492_s2 + $0xc4] ss:$16 sps:$4 sm:$0xff]   ;;  %1320 = vmatprep.subr.bf16.mxu1 %v4887_v1  ;;  %1280 = vmatpush1.bf16.msra.mxu0 %v4889_v2  ;;  %v4895_v6 = vld [vmem:[%s7492_s2 + $0xc0] ss:$16 sps:$4 sm:$0xff]   ;;  %v5953_v53 = vpack.c.bf16 %v4986_v50, %v4986_v50  ;;  %vm1275_vm0 = vcmask 130048   ;;  %vm4264_vm1 = vcmask 1041408  }
   0x4   :  { %v4893_v5 = vld [vmem:[%s7492_s2 + $0x2c4] ss:$16 sps:$4 sm:$0xff]   ;;  %1321 = vmatpush1.bf16.msra.mxu1 %v4890_v3  ;;  %1281 = vmatprep.subr.bf16.mxu0 %v4891_v4  ;;  %v4896_v7 = vld [vmem:[%s7492_s2 + $0x2c0] ss:$16 sps:$4 sm:$0xff]   ;;  %vm4265_vm2 = vcmask 1043458   ;;  %vm4267_vm4 = vcmask 128004  }
   0x5   :  { %1322 = vmatprep.subr.bf16.mxu1 %v4893_v5  ;;  %v4897_v8 = vld [vmem:[%s7492_s2 + $0xa4] ss:$16 sps:$4 sm:$0xff]   ;;  %v4901_v10 = vld [vmem:[%s7492_s2 + $0xa0] ss:$16 sps:$4 sm:$0xff]   ;;  %1352 = vmatprep.mubr.bf16.mxu1 %v5953_v53  ;;  %vm4266_vm3 = vmor %vm4265_vm2, %vm4264_vm1 }
   0x6   :  { %v4899_v9 = vld [vmem:[%s7492_s2 + $0x2a4] ss:$16 sps:$4 sm:$0xff]   ;;  %v4902_v11 = vld [vmem:[%s7492_s2 + $0x2a0] ss:$16 sps:$4 sm:$0xff]   ;;  %vm4268_vm5 = vmor %vm4267_vm4, %vm4266_vm3 }
   0x7   :  { %1282 = vmatpush1.bf16.msra.mxu0 %v4895_v6  ;;  %v4903_v12 = vld [vmem:[%s7492_s2 + $0x84] ss:$16 sps:$4 sm:$0xff]   ;;  %v4907_v14 = vld [vmem:[%s7492_s2 + $0x80] ss:$16 sps:$4 sm:$0xff]  }
   0x8   :  { %1323 = vmatpush1.bf16.msra.mxu1 %v4896_v7  ;;  %1283 = vmatprep.subr.bf16.mxu0 %v4897_v8  ;;  %v4905_v13 = vld [vmem:[%s7492_s2 + $0x284] ss:$16 sps:$4 sm:$0xff]   ;;  %v4908_v15 = vld [vmem:[%s7492_s2 + $0x280] ss:$16 sps:$4 sm:$0xff]  }
   0x9   :  { %1324 = vmatprep.subr.bf16.mxu1 %v4899_v9  ;;  %v4909_v16 = vld [vmem:[%s7492_s2 + $0x64] ss:$16 sps:$4 sm:$0xff]   ;;  %v4913_v18 = vld [vmem:[%s7492_s2 + $0x60] ss:$16 sps:$4 sm:$0xff]  }
   0xa   :  { %v4911_v17 = vld [vmem:[%s7492_s2 + $0x264] ss:$16 sps:$4 sm:$0xff]   ;;  %v4914_v19 = vld [vmem:[%s7492_s2 + $0x260] ss:$16 sps:$4 sm:$0xff]  }
   0xb   :  { %1284 = vmatpush1.bf16.msra.mxu0 %v4901_v10  ;;  %v4915_v20 = vld [vmem:[%s7492_s2 + $0x44] ss:$16 sps:$4 sm:$0xff]   ;;  %v4919_v22 = vld [vmem:[%s7492_s2 + $0x40] ss:$16 sps:$4 sm:$0xff]  }
   0xc   :  { %1325 = vmatpush1.bf16.msra.mxu1 %v4902_v11  ;;  %1285 = vmatprep.subr.bf16.mxu0 %v4903_v12  ;;  %v4917_v21 = vld [vmem:[%s7492_s2 + $0x244] ss:$16 sps:$4 sm:$0xff]   ;;  %v4920_v23 = vld [vmem:[%s7492_s2 + $0x240] ss:$16 sps:$4 sm:$0xff]  }
   0xd   :  { %1326 = vmatprep.subr.bf16.mxu1 %v4905_v13  ;;  %v4921_v24 = vld [vmem:[%s7492_s2 + $0x24] ss:$16 sps:$4 sm:$0xff]   ;;  %v4925_v26 = vld [vmem:[%s7492_s2 + $0x20] ss:$16 sps:$4 sm:$0xff]   ;;  %v4998_v13 = vld [vmem:[%s7492_s2 + $0xec] ss:$16 sps:$4 sm:$0xff]  }
   0xe   :  { %v4923_v25 = vld [vmem:[%s7492_s2 + $0x224] ss:$16 sps:$4 sm:$0xff]   ;;  %v4926_v27 = vld [vmem:[%s7492_s2 + $0x220] ss:$16 sps:$4 sm:$0xff]  }
   0xf   :  { %1286 = vmatpush1.bf16.msra.mxu0 %v4907_v14  ;;  %v4927_v28 = vld [vmem:[%s7492_s2 + $0x4] ss:$16 sps:$4 sm:$0xff]   ;;  %v4931_v30 = vld [vmem:[%s7492_s2] ss:$16 sps:$4 sm:$0xff]  }
  0x10   :  { %1327 = vmatpush1.bf16.msra.mxu1 %v4908_v15  ;;  %1287 = vmatprep.subr.bf16.mxu0 %v4909_v16  ;;  %v4929_v29 = vld [vmem:[%s7492_s2 + $0x204] ss:$16 sps:$4 sm:$0xff]   ;;  %v4932_v31 = vld [vmem:[%s7492_s2 + $0x200] ss:$16 sps:$4 sm:$0xff]  }
  0x11   :  { %1328 = vmatprep.subr.bf16.mxu1 %v4911_v17  ;;  %v4933_v32 = vld [vmem:[%s7492_s2 + $0x1e4] ss:$16 sps:$4 sm:$0xff]   ;;  %v4937_v34 = vld [vmem:[%s7492_s2 + $0x1e0] ss:$16 sps:$4 sm:$0xff]   ;;  %v5727_v17 = vmov 0  }
  0x12   :  { %v4935_v33 = vld [vmem:[%s7492_s2 + $0x3e4] ss:$16 sps:$4 sm:$0xff]   ;;  %v4938_v35 = vld [vmem:[%s7492_s2 + $0x3e0] ss:$16 sps:$4 sm:$0xff]  }
  0x13   :  { %1288 = vmatpush1.bf16.msra.mxu0 %v4913_v18  ;;  %v4939_v36 = vld [vmem:[%s7492_s2 + $0x1c4] ss:$16 sps:$4 sm:$0xff]   ;;  %v4943_v38 = vld [vmem:[%s7492_s2 + $0x1c0] ss:$16 sps:$4 sm:$0xff]   ;;  %v4996_v18 = vld [vmem:[%s7492_s2 + $0xe8] ss:$16 sps:$4 sm:$0xff]  }
  0x14   :  { %1329 = vmatpush1.bf16.msra.mxu1 %v4914_v19  ;;  %1289 = vmatprep.subr.bf16.mxu0 %v4915_v20  ;;  %v4941_v37 = vld [vmem:[%s7492_s2 + $0x3c4] ss:$16 sps:$4 sm:$0xff]   ;;  %v4944_v39 = vld [vmem:[%s7492_s2 + $0x3c0] ss:$16 sps:$4 sm:$0xff]  }
  0x15   :  { %1330 = vmatprep.subr.bf16.mxu1 %v4917_v21  ;;  %v4945_v40 = vld [vmem:[%s7492_s2 + $0x1a4] ss:$16 sps:$4 sm:$0xff]   ;;  %v4949_v42 = vld [vmem:[%s7492_s2 + $0x1a0] ss:$16 sps:$4 sm:$0xff]  }
  0x16   :  { %v4947_v41 = vld [vmem:[%s7492_s2 + $0x3a4] ss:$16 sps:$4 sm:$0xff]   ;;  %v4950_v43 = vld [vmem:[%s7492_s2 + $0x3a0] ss:$16 sps:$4 sm:$0xff]  }
  0x17   :  { %1290 = vmatpush1.bf16.msra.mxu0 %v4919_v22  ;;  %v4951_v44 = vld [vmem:[%s7492_s2 + $0x184] ss:$16 sps:$4 sm:$0xff]   ;;  %v4955_v46 = vld [vmem:[%s7492_s2 + $0x180] ss:$16 sps:$4 sm:$0xff]   ;;  %v5005_v22 = vld [vmem:[%s7492_s2 + $0xcc] ss:$16 sps:$4 sm:$0xff]  }
  0x18   :  { %1331 = vmatpush1.bf16.msra.mxu1 %v4920_v23  ;;  %1291 = vmatprep.subr.bf16.mxu0 %v4921_v24  ;;  %v4953_v45 = vld [vmem:[%s7492_s2 + $0x384] ss:$16 sps:$4 sm:$0xff]   ;;  %v4956_v47 = vld [vmem:[%s7492_s2 + $0x380] ss:$16 sps:$4 sm:$0xff]   ;;  %v5003_v23 = vld [vmem:[%s7492_s2 + $0xc8] ss:$16 sps:$4 sm:$0xff]  }
  0x19   :  { %1332 = vmatprep.subr.bf16.mxu1 %v4923_v25  ;;  %v4983_v48 = vld [vmem:[%s7490_s0 + $0x4] ss:$28 sps:$4 sm:$0xff]   ;;  %v5002_v15 = vld [vmem:[%s7490_s0 + $0x18] ss:$28 sps:$4 sm:$0xff]  }
  0x1a   :  { %v4957_v49 = vld [vmem:[%s7492_s2 + $0x164] ss:$16 sps:$4 sm:$0xff]   ;;  %v5951_v52 = vpack.c.bf16 %v4983_v48, %v4983_v48  ;;  %v4961_v54 = vld [vmem:[%s7492_s2 + $0x160] ss:$16 sps:$4 sm:$0xff]   ;;  %v6045_v20 = vpack.c.bf16 %v5002_v15, %v5002_v15  ;;  %v5041_v48 = vld [vmem:[%s7492_s2 + $0xc] ss:$16 sps:$4 sm:$0xff]  }
  0x1b   :  { %1292 = vmatpush1.bf16.msra.mxu0 %v4925_v26  ;;  %v4959_v51 = vld [vmem:[%s7492_s2 + $0x364] ss:$16 sps:$4 sm:$0xff]   ;;  %v4962_v55 = vld [vmem:[%s7492_s2 + $0x360] ss:$16 sps:$4 sm:$0xff]   ;;  %v5011_v26 = vld [vmem:[%s7492_s2 + $0xac] ss:$16 sps:$4 sm:$0xff]  }
  0x1c   :  { %1333 = vmatpush1.bf16.msra.mxu1 %v4926_v27  ;;  %1293 = vmatprep.subr.bf16.mxu0 %v4927_v28  ;;  %v4963_v56 = vld [vmem:[%s7492_s2 + $0x144] ss:$16 sps:$4 sm:$0xff]   ;;  %v4967_v58 = vld [vmem:[%s7492_s2 + $0x140] ss:$16 sps:$4 sm:$0xff]   ;;  %v5009_v27 = vld [vmem:[%s7492_s2 + $0xa8] ss:$16 sps:$4 sm:$0xff]  }
  0x1d   :  { %1334 = vmatprep.subr.bf16.mxu1 %v4929_v29  ;;  %1311 = vmatprep.mubr.bf16.mxu0 %v5951_v52  ;;  %v4965_v57 = vld [vmem:[%s7492_s2 + $0x344] ss:$16 sps:$4 sm:$0xff]   ;;  %v4968_v59 = vld [vmem:[%s7492_s2 + $0x340] ss:$16 sps:$4 sm:$0xff]   ;;  %v5089_v15 = vld [vmem:[%s7492_s2 + $0x2ec] ss:$16 sps:$4 sm:$0xff]  }
  0x1e   :  { %v4969_v60 = vld [vmem:[%s7492_s2 + $0x124] ss:$16 sps:$4 sm:$0xff]   ;;  %v4973_v62 = vld [vmem:[%s7492_s2 + $0x120] ss:$16 sps:$4 sm:$0xff]  }
  0x1f   :  { %1294 = vmatpush1.bf16.msra.mxu0 %v4931_v30  ;;  %v4971_v61 = vld [vmem:[%s7492_s2 + $0x324] ss:$16 sps:$4 sm:$0xff]   ;;  %v4974_v63 = vld [vmem:[%s7492_s2 + $0x320] ss:$16 sps:$4 sm:$0xff]   ;;  %v5017_v30 = vld [vmem:[%s7492_s2 + $0x8c] ss:$16 sps:$4 sm:$0xff]  }
  0x20   :  { %1335 = vmatpush1.bf16.msra.mxu1 %v4932_v31  ;;  %1295 = vmatprep.subr.bf16.mxu0 %v4933_v32  ;;  %v4975_v0 = vld [vmem:[%s7492_s2 + $0x104] ss:$16 sps:$4 sm:$0xff]   ;;  %v4979_v2 = vld [vmem:[%s7492_s2 + $0x100] ss:$16 sps:$4 sm:$0xff]   ;;  %v5015_v31 = vld [vmem:[%s7492_s2 + $0x88] ss:$16 sps:$4 sm:$0xff]  }
  0x21   :  { %1336 = vmatprep.subr.bf16.mxu1 %v4935_v33  ;;  %v4977_v1 = vld [vmem:[%s7492_s2 + $0x304] ss:$16 sps:$4 sm:$0xff]   ;;  %v4980_v3 = vld [vmem:[%s7492_s2 + $0x300] ss:$16 sps:$4 sm:$0xff]  }
  0x22   :  { %v4981_v4 = vld [vmem:[%s7490_s0] ss:$28 sps:$4 sm:$0xff]   ;;  %v4984_v5 = vld [vmem:[%s7490_s0 + $0x8] ss:$28 sps:$4 sm:$0xff]  }
  0x23   :  { %1296 = vmatpush2.bf16.msra.mxu0 %v4937_v34  ;;  %v4989_v6 = vld [vmem:[%s7492_s2 + $0x4e4] ss:$16 sps:$4 sm:$0xff]   ;;  %v6011_v8 = vpack.c.bf16 %v4981_v4, %v4981_v4  ;;  %v4987_v9 = vld [vmem:[%s7492_s2 + $0x4e0] ss:$16 sps:$4 sm:$0xff]   ;;  %v6016_v10 = vpack.c.bf16 %v4984_v5, %v4984_v5  ;;  %v5023_v34 = vld [vmem:[%s7492_s2 + $0x6c] ss:$16 sps:$4 sm:$0xff]  }
  0x24   :  { %1337 = vmatpush2.bf16.msra.mxu1 %v4938_v35  ;;  %1297 = vmatprep.subr.bf16.mxu0 %v4939_v36  ;;  %v4992_v7 = vld [vmem:[%s7492_s2 + $0x604] ss:$16 sps:$4 sm:$0xff]   ;;  %v4990_v11 = vld [vmem:[%s7492_s2 + $0x600] ss:$16 sps:$4 sm:$0xff]   ;;  %v5021_v35 = vld [vmem:[%s7492_s2 + $0x68] ss:$16 sps:$4 sm:$0xff]  }
  0x25   :  { %1338 = vmatprep.subr.bf16.mxu1 %v4941_v37  ;;  %v4995_v12 = vld [vmem:[%s7492_s2 + $0x4c4] ss:$16 sps:$4 sm:$0xff]   ;;  %v4993_v14 = vld [vmem:[%s7492_s2 + $0x4c0] ss:$16 sps:$4 sm:$0xff]   ;;  %v5071_v5 = vld [vmem:[%s7492_s2 + $0x16c] ss:$16 sps:$4 sm:$0xff]  }
  0x26   :  { %v5001_v16 = vld [vmem:[%s7492_s2 + $0x4a4] ss:$16 sps:$4 sm:$0xff]   ;;  %v4999_v19 = vld [vmem:[%s7492_s2 + $0x4a0] ss:$16 sps:$4 sm:$0xff]  }
  0x27   :  { %1298 = vmatpush2.bf16.msra.mxu0 %v4943_v38  ;;  %v5008_v21 = vld [vmem:[%s7492_s2 + $0x484] ss:$16 sps:$4 sm:$0xff]   ;;  %v5006_v24 = vld [vmem:[%s7492_s2 + $0x480] ss:$16 sps:$4 sm:$0xff]  }
  0x28   :  { %1339 = vmatpush2.bf16.msra.mxu1 %v4944_v39  ;;  %1299 = vmatprep.subr.bf16.mxu0 %v4945_v40  ;;  %v5014_v25 = vld [vmem:[%s7492_s2 + $0x464] ss:$16 sps:$4 sm:$0xff]   ;;  %v5012_v28 = vld [vmem:[%s7492_s2 + $0x460] ss:$16 sps:$4 sm:$0xff]   ;;  %v5029_v39 = vld [vmem:[%s7492_s2 + $0x4c] ss:$16 sps:$4 sm:$0xff]  }
  0x29   :  { %1340 = vmatprep.subr.bf16.mxu1 %v4947_v41  ;;  %v5020_v29 = vld [vmem:[%s7492_s2 + $0x444] ss:$16 sps:$4 sm:$0xff]   ;;  %v5018_v32 = vld [vmem:[%s7492_s2 + $0x440] ss:$16 sps:$4 sm:$0xff]   ;;  %v5027_v40 = vld [vmem:[%s7492_s2 + $0x48] ss:$16 sps:$4 sm:$0xff]  }
  0x2a   :  { %v5026_v33 = vld [vmem:[%s7492_s2 + $0x424] ss:$16 sps:$4 sm:$0xff]   ;;  %v5024_v36 = vld [vmem:[%s7492_s2 + $0x420] ss:$16 sps:$4 sm:$0xff]  }
  0x2b   :  { %1300 = vmatpush2.bf16.msra.mxu0 %v4949_v42  ;;  %v5032_v37 = vld [vmem:[%s7492_s2 + $0x404] ss:$16 sps:$4 sm:$0xff]   ;;  %v5030_v42 = vld [vmem:[%s7492_s2 + $0x400] ss:$16 sps:$4 sm:$0xff]  }
  0x2c   :  { %1341 = vmatpush2.bf16.msra.mxu1 %v4950_v43  ;;  %1301 = vmatprep.subr.bf16.mxu0 %v4951_v44  ;;  %v5083_v38 = vld [vmem:[%s7490_s0 + $0x14] ss:$28 sps:$4 sm:$0xff]   ;;  %v5035_v44 = vld [vmem:[%s7492_s2 + $0x2c] ss:$16 sps:$4 sm:$0xff]  }
  0x2d   :  { %1342 = vmatprep.subr.bf16.mxu1 %v4953_v45  ;;  %v6110_v41 = vpack.c.bf16 %v5083_v38, %v5083_v38  ;;  %v5038_v43 = vld [vmem:[%s7492_s2 + $0x5e4] ss:$16 sps:$4 sm:$0xff]   ;;  %v5033_v45 = vld [vmem:[%s7492_s2 + $0x28] ss:$16 sps:$4 sm:$0xff]   ;;  %v5042_v50 = vld [vmem:[%s7492_s2 + $0x5c0] ss:$16 sps:$4 sm:$0xff]  }
  0x2e   :  { %v5074_v4 = vld [vmem:[%s7492_s2 + $0x524] ss:$16 sps:$4 sm:$0xff]   ;;  %v5117_v38 = vld [vmem:[%s7492_s2 + $0x248] ss:$16 sps:$4 sm:$0xff]  }
  0x2f   :  { %1302 = vmatpush2.bf16.msra.mxu0 %v4955_v46  ;;  %v5036_v46 = vld [vmem:[%s7492_s2 + $0x5e0] ss:$16 sps:$4 sm:$0xff]  }
  0x30   :  { %1343 = vmatpush2.bf16.msra.mxu1 %v4956_v47  ;;  %1303 = vmatprep.subr.bf16.mxu0 %v4957_v49  ;;  %v5044_v47 = vld [vmem:[%s7492_s2 + $0x5c4] ss:$16 sps:$4 sm:$0xff]   ;;  %v5039_v49 = vld [vmem:[%s7492_s2 + $0x8] ss:$16 sps:$4 sm:$0xff]  }
  0x31   :  { %1344 = vmatprep.subr.bf16.mxu1 %v4959_v51  ;;  %v5050_v51 = vld [vmem:[%s7492_s2 + $0x5a4] ss:$16 sps:$4 sm:$0xff]  }
  0x33   :  { %1304 = vmatpush2.bf16.msra.mxu0 %v4961_v54  ;;  %v5045_v54 = vld [vmem:[%s7492_s2 + $0x1e8] ss:$16 sps:$4 sm:$0xff]  }
  0x34   :  { %1345 = vmatpush2.bf16.msra.mxu1 %v4962_v55  ;;  %1305 = vmatprep.subr.bf16.mxu0 %v4963_v56  ;;  %v5048_v55 = vld [vmem:[%s7492_s2 + $0x5a0] ss:$16 sps:$4 sm:$0xff]   ;;  %v5056_v56 = vld [vmem:[%s7492_s2 + $0x584] ss:$16 sps:$4 sm:$0xff]  }
  0x35   :  { %1346 = vmatprep.subr.bf16.mxu1 %v4965_v57  ;;  %v5053_v57 = vld [vmem:[%s7492_s2 + $0x1cc] ss:$16 sps:$4 sm:$0xff]  }
  0x37   :  { %1306 = vmatpush2.bf16.msra.mxu0 %v4967_v58  ;;  %v5051_v58 = vld [vmem:[%s7492_s2 + $0x1c8] ss:$16 sps:$4 sm:$0xff]  }
  0x38   :  { %1347 = vmatpush2.bf16.msra.mxu1 %v4968_v59  ;;  %1307 = vmatprep.subr.bf16.mxu0 %v4969_v60  ;;  %v5054_v59 = vld [vmem:[%s7492_s2 + $0x580] ss:$16 sps:$4 sm:$0xff]   ;;  %v5062_v60 = vld [vmem:[%s7492_s2 + $0x564] ss:$16 sps:$4 sm:$0xff]  }
  0x39   :  { %1348 = vmatprep.subr.bf16.mxu1 %v4971_v61  ;;  %v5059_v61 = vld [vmem:[%s7492_s2 + $0x1ac] ss:$16 sps:$4 sm:$0xff]  }
  0x3b   :  { %1308 = vmatpush2.bf16.msra.mxu0 %v4973_v62  ;;  %v5057_v62 = vld [vmem:[%s7492_s2 + $0x1a8] ss:$16 sps:$4 sm:$0xff]  }
  0x3c   :  { %1349 = vmatpush2.bf16.msra.mxu1 %v4974_v63  ;;  %1309 = vmatprep.subr.bf16.mxu0 %v4975_v0  ;;  %v5060_v63 = vld [vmem:[%s7492_s2 + $0x560] ss:$16 sps:$4 sm:$0xff]   ;;  %v5068_v0 = vld [vmem:[%s7492_s2 + $0x544] ss:$16 sps:$4 sm:$0xff]  }
  0x3d   :  { %1350 = vmatprep.subr.bf16.mxu1 %v4977_v1  ;;  %v5065_v1 = vld [vmem:[%s7492_s2 + $0x18c] ss:$16 sps:$4 sm:$0xff]  }
  0x3f   :  { %1310 = vmatpush2.bf16.msra.mxu0 %v4979_v2  ;;  %v5063_v2 = vld [vmem:[%s7492_s2 + $0x188] ss:$16 sps:$4 sm:$0xff]  }
  0x40   :  { %1351 = vmatpush2.bf16.msra.mxu1 %v4980_v3  ;;  %1361 = vmatprep.subr.bf16.mxu0 %v4989_v6  ;;  %v5066_v3 = vld [vmem:[%s7492_s2 + $0x540] ss:$16 sps:$4 sm:$0xff]   ;;  %v5069_v6 = vld [vmem:[%s7492_s2 + $0x168] ss:$16 sps:$4 sm:$0xff]  }
  0x41   :  { %1416 = vmatprep.subr.bf16.mxu1 %v4992_v7  ;;  %v5072_v7 = vld [vmem:[%s7492_s2 + $0x520] ss:$16 sps:$4 sm:$0xff]  }
  0x42   :  { %1312 = vmatmul.mubr.bf16.vlgmr.msra.gmra.mxu0 %v6011_v8 }
  0x43   :  { %1353 = vmatmul.mubr.bf16.vlgmr.msra.gmra.mxu1 %v6016_v10  ;;  %1362 = vmatpush1.bf16.msra.mxu0 %v4987_v9  ;;  %v5080_v9 = vld [vmem:[%s7492_s2 + $0x504] ss:$16 sps:$4 sm:$0xff]  }
  0x44   :  { %1417 = vmatpush1.bf16.msra.mxu1 %v4990_v11  ;;  %1363 = vmatprep.subr.bf16.mxu0 %v4995_v12  ;;  %v5077_v11 = vld [vmem:[%s7492_s2 + $0x14c] ss:$16 sps:$4 sm:$0xff]   ;;  %v5075_v12 = vld [vmem:[%s7492_s2 + $0x148] ss:$16 sps:$4 sm:$0xff]  }
  0x45   :  { %1434 = vmatprep.mubr.bf16.mxu1 %v5727_v17  ;;  %1443 = vmatprep.subr.bf16.mxu1 %v4998_v13  ;;  %v5081_v13 = vld [vmem:[%s7490_s0 + $0x10] ss:$28 sps:$4 sm:$0xff]  }
  0x46   :  { %1393 = vmatprep.mubr.bf16.mxu0 %v6110_v41 }
  0x47   :  { %1364 = vmatpush1.bf16.msra.mxu0 %v4993_v14  ;;  %v5078_v14 = vld [vmem:[%s7492_s2 + $0x500] ss:$16 sps:$4 sm:$0xff]  }
  0x48   :  { %1365 = vmatprep.subr.bf16.mxu0 %v5001_v16  ;;  %v5086_v16 = vld [vmem:[%s7492_s2 + $0x12c] ss:$16 sps:$4 sm:$0xff]  }
  0x4b   :  { %4508 = vmatmul.mubr.msk.bf16.vlgmr.msra.gmra.mxu1 %vm1275_vm0, %v6045_v20  ;;  %1366 = vmatpush1.bf16.msra.mxu0 %v4999_v19  ;;  %v5084_v19 = vld [vmem:[%s7492_s2 + $0x128] ss:$16 sps:$4 sm:$0xff]  }
  0x4c   :  { %1444 = vmatpush1.bf16.msra.mxu1 %v4996_v18  ;;  %1367 = vmatprep.subr.bf16.mxu0 %v5008_v21  ;;  %v6221_v18 = vpack.c.bf16 %v5081_v13, %v5081_v13  ;;  %v5087_v21 = vld [vmem:[%s7492_s2 + $0x2e8] ss:$16 sps:$4 sm:$0xff]  }
  0x4d   :  { %1445 = vmatprep.subr.bf16.mxu1 %v5005_v22  ;;  %1475 = vmatprep.mubr.bf16.mxu1 %v5951_v52  ;;  %v5047_v52 = vld [vmem:[%s7492_s2 + $0x1ec] ss:$16 sps:$4 sm:$0xff]   ;;  %v5171_v13 = vld [vmem:[%s7492_s2 + $0x328] ss:$16 sps:$4 sm:$0xff]  }
  0x4e   :  { %v5095_v22 = vld [vmem:[%s7492_s2 + $0x2cc] ss:$16 sps:$4 sm:$0xff]  }
  0x4f   :  { %1368 = vmatpush1.bf16.msra.mxu0 %v5006_v24  ;;  %v5090_v24 = vld [vmem:[%s7492_s2 + $0x108] ss:$16 sps:$4 sm:$0xff]  }
  0x50   :  { %1446 = vmatpush1.bf16.msra.mxu1 %v5003_v23  ;;  %1369 = vmatprep.subr.bf16.mxu0 %v5014_v25  ;;  %v5092_v23 = vld [vmem:[%s7492_s2 + $0x10c] ss:$16 sps:$4 sm:$0xff]   ;;  %v5093_v25 = vld [vmem:[%s7492_s2 + $0x2c8] ss:$16 sps:$4 sm:$0xff]  }
  0x51   :  { %1447 = vmatprep.subr.bf16.mxu1 %v5011_v26  ;;  %v5101_v26 = vld [vmem:[%s7492_s2 + $0x2ac] ss:$16 sps:$4 sm:$0xff]  }
  0x53   :  { %1370 = vmatpush1.bf16.msra.mxu0 %v5012_v28  ;;  %v5096_v28 = vld [vmem:[%s7492_s2 + $0x4e8] ss:$16 sps:$4 sm:$0xff]  }
  0x54   :  { %1448 = vmatpush1.bf16.msra.mxu1 %v5009_v27  ;;  %1371 = vmatprep.subr.bf16.mxu0 %v5020_v29  ;;  %v5098_v27 = vld [vmem:[%s7492_s2 + $0x4ec] ss:$16 sps:$4 sm:$0xff]   ;;  %v5099_v29 = vld [vmem:[%s7492_s2 + $0x2a8] ss:$16 sps:$4 sm:$0xff]  }
  0x55   :  { %1449 = vmatprep.subr.bf16.mxu1 %v5017_v30  ;;  %v5107_v30 = vld [vmem:[%s7492_s2 + $0x28c] ss:$16 sps:$4 sm:$0xff]  }
  0x57   :  { %1372 = vmatpush1.bf16.msra.mxu0 %v5018_v32  ;;  %v5102_v32 = vld [vmem:[%s7492_s2 + $0x4c8] ss:$16 sps:$4 sm:$0xff]  }
  0x58   :  { %1450 = vmatpush1.bf16.msra.mxu1 %v5015_v31  ;;  %1373 = vmatprep.subr.bf16.mxu0 %v5026_v33  ;;  %v5105_v31 = vld [vmem:[%s7492_s2 + $0x288] ss:$16 sps:$4 sm:$0xff]   ;;  %v5113_v33 = vld [vmem:[%s7492_s2 + $0x26c] ss:$16 sps:$4 sm:$0xff]  }
  0x59   :  { %1451 = vmatprep.subr.bf16.mxu1 %v5023_v34  ;;  %v5110_v34 = vld [vmem:[%s7492_s2 + $0x4ac] ss:$16 sps:$4 sm:$0xff]  }
  0x5b   :  { %1374 = vmatpush1.bf16.msra.mxu0 %v5024_v36  ;;  %v5111_v36 = vld [vmem:[%s7492_s2 + $0x268] ss:$16 sps:$4 sm:$0xff]  }
  0x5c   :  { %1452 = vmatpush1.bf16.msra.mxu1 %v5021_v35  ;;  %1375 = vmatprep.subr.bf16.mxu0 %v5032_v37  ;;  %v5108_v35 = vld [vmem:[%s7492_s2 + $0x4a8] ss:$16 sps:$4 sm:$0xff]   ;;  %v5116_v37 = vld [vmem:[%s7492_s2 + $0x48c] ss:$16 sps:$4 sm:$0xff]  }
  0x5d   :  { %1453 = vmatprep.subr.bf16.mxu1 %v5029_v39  ;;  %v5114_v39 = vld [vmem:[%s7492_s2 + $0x488] ss:$16 sps:$4 sm:$0xff]  }
  0x5f   :  { %1376 = vmatpush1.bf16.msra.mxu0 %v5030_v42  ;;  %v5123_v42 = vld [vmem:[%s7492_s2 + $0x228] ss:$16 sps:$4 sm:$0xff]  }
  0x60   :  { %1454 = vmatpush1.bf16.msra.mxu1 %v5027_v40  ;;  %1377 = vmatprep.subr.bf16.mxu0 %v5038_v43  ;;  %v5125_v40 = vld [vmem:[%s7492_s2 + $0x22c] ss:$16 sps:$4 sm:$0xff]   ;;  %v5120_v43 = vld [vmem:[%s7492_s2 + $0x468] ss:$16 sps:$4 sm:$0xff]  }
  0x61   :  { %1455 = vmatprep.subr.bf16.mxu1 %v5035_v44  ;;  %v5128_v44 = vld [vmem:[%s7492_s2 + $0x44c] ss:$16 sps:$4 sm:$0xff]  }
  0x63   :  { %1378 = vmatpush2.bf16.msra.mxu0 %v5036_v46  ;;  %v5129_v46 = vld [vmem:[%s7492_s2 + $0x208] ss:$16 sps:$4 sm:$0xff]  }
  0x64   :  { %1456 = vmatpush1.bf16.msra.mxu1 %v5033_v45  ;;  %1379 = vmatprep.subr.bf16.mxu0 %v5044_v47  ;;  %v5131_v45 = vld [vmem:[%s7492_s2 + $0x20c] ss:$16 sps:$4 sm:$0xff]   ;;  %v5126_v47 = vld [vmem:[%s7492_s2 + $0x448] ss:$16 sps:$4 sm:$0xff]  }
  0x65   :  { %1457 = vmatprep.subr.bf16.mxu1 %v5041_v48  ;;  %v5137_v48 = vld [vmem:[%s7492_s2 + $0x3ec] ss:$16 sps:$4 sm:$0xff]  }
  0x67   :  { %1380 = vmatpush2.bf16.msra.mxu0 %v5042_v50  ;;  %v5135_v50 = vld [vmem:[%s7492_s2 + $0x3e8] ss:$16 sps:$4 sm:$0xff]  }
  0x68   :  { %1458 = vmatpush1.bf16.msra.mxu1 %v5039_v49  ;;  %1381 = vmatprep.subr.bf16.mxu0 %v5050_v51  ;;  %v5134_v49 = vld [vmem:[%s7492_s2 + $0x42c] ss:$16 sps:$4 sm:$0xff]   ;;  %v5132_v51 = vld [vmem:[%s7492_s2 + $0x428] ss:$16 sps:$4 sm:$0xff]  }
  0x69   :  { %1459 = vmatprep.subr.bf16.mxu1 %v5047_v52  ;;  %v5143_v52 = vld [vmem:[%s7492_s2 + $0x3cc] ss:$16 sps:$4 sm:$0xff]  }
  0x6b   :  { %1382 = vmatpush2.bf16.msra.mxu0 %v5048_v55  ;;  %v5141_v55 = vld [vmem:[%s7492_s2 + $0x3c8] ss:$16 sps:$4 sm:$0xff]  }
  0x6c   :  { %1460 = vmatpush2.bf16.msra.mxu1 %v5045_v54  ;;  %1383 = vmatprep.subr.bf16.mxu0 %v5056_v56  ;;  %v5140_v54 = vld [vmem:[%s7492_s2 + $0x40c] ss:$16 sps:$4 sm:$0xff]   ;;  %v5138_v56 = vld [vmem:[%s7492_s2 + $0x408] ss:$16 sps:$4 sm:$0xff]  }
  0x6d   :  { %1461 = vmatprep.subr.bf16.mxu1 %v5053_v57  ;;  %v5149_v57 = vld [vmem:[%s7492_s2 + $0x3ac] ss:$16 sps:$4 sm:$0xff]  }
  0x6f   :  { %1384 = vmatpush2.bf16.msra.mxu0 %v5054_v59  ;;  %v5147_v59 = vld [vmem:[%s7492_s2 + $0x3a8] ss:$16 sps:$4 sm:$0xff]  }
  0x70   :  { %1462 = vmatpush2.bf16.msra.mxu1 %v5051_v58  ;;  %1385 = vmatprep.subr.bf16.mxu0 %v5062_v60  ;;  %v5146_v58 = vld [vmem:[%s7492_s2 + $0x5ec] ss:$16 sps:$4 sm:$0xff]   ;;  %v5144_v60 = vld [vmem:[%s7492_s2 + $0x5e8] ss:$16 sps:$4 sm:$0xff]  }
  0x71   :  { %1463 = vmatprep.subr.bf16.mxu1 %v5059_v61  ;;  %v5155_v61 = vld [vmem:[%s7492_s2 + $0x38c] ss:$16 sps:$4 sm:$0xff]  }
  0x73   :  { %1386 = vmatpush2.bf16.msra.mxu0 %v5060_v63  ;;  %v5153_v63 = vld [vmem:[%s7492_s2 + $0x388] ss:$16 sps:$4 sm:$0xff]  }
  0x74   :  { %1464 = vmatpush2.bf16.msra.mxu1 %v5057_v62  ;;  %1387 = vmatprep.subr.bf16.mxu0 %v5068_v0  ;;  %v5152_v62 = vld [vmem:[%s7492_s2 + $0x5cc] ss:$16 sps:$4 sm:$0xff]   ;;  %v5150_v0 = vld [vmem:[%s7492_s2 + $0x5c8] ss:$16 sps:$4 sm:$0xff]  }
  0x75   :  { %1465 = vmatprep.subr.bf16.mxu1 %v5065_v1  ;;  %v5161_v1 = vld [vmem:[%s7492_s2 + $0x36c] ss:$16 sps:$4 sm:$0xff]  }
  0x77   :  { %1388 = vmatpush2.bf16.msra.mxu0 %v5066_v3  ;;  %v5159_v3 = vld [vmem:[%s7492_s2 + $0x368] ss:$16 sps:$4 sm:$0xff]  }
  0x78   :  { %1466 = vmatpush2.bf16.msra.mxu1 %v5063_v2  ;;  %1389 = vmatprep.subr.bf16.mxu0 %v5074_v4  ;;  %v5158_v2 = vld [vmem:[%s7492_s2 + $0x5ac] ss:$16 sps:$4 sm:$0xff]   ;;  %v5156_v4 = vld [vmem:[%s7492_s2 + $0x5a8] ss:$16 sps:$4 sm:$0xff]  }
  0x79   :  { %1467 = vmatprep.subr.bf16.mxu1 %v5071_v5  ;;  %v5167_v5 = vld [vmem:[%s7492_s2 + $0x34c] ss:$16 sps:$4 sm:$0xff]  }
  0x7b   :  { %1390 = vmatpush2.bf16.msra.mxu0 %v5072_v7  ;;  %v5165_v7 = vld [vmem:[%s7492_s2 + $0x348] ss:$16 sps:$4 sm:$0xff]  }
  0x7c   :  { %1468 = vmatpush2.bf16.msra.mxu1 %v5069_v6  ;;  %1391 = vmatprep.subr.bf16.mxu0 %v5080_v9  ;;  %v5164_v6 = vld [vmem:[%s7492_s2 + $0x58c] ss:$16 sps:$4 sm:$0xff]   ;;  %v5162_v9 = vld [vmem:[%s7492_s2 + $0x588] ss:$16 sps:$4 sm:$0xff]  }
  0x7d   :  { %1469 = vmatprep.subr.bf16.mxu1 %v5077_v11  ;;  %v5173_v11 = vld [vmem:[%s7492_s2 + $0x32c] ss:$16 sps:$4 sm:$0xff]  }
  0x7f   :  { %1392 = vmatpush2.bf16.msra.mxu0 %v5078_v14  ;;  %v5168_v14 = vld [vmem:[%s7492_s2 + $0x568] ss:$16 sps:$4 sm:$0xff]  }
  0x80   :  { %1470 = vmatpush2.bf16.msra.mxu1 %v5075_v12  ;;  %1484 = vmatprep.subr.bf16.mxu0 %v5089_v15  ;;  %v5170_v12 = vld [vmem:[%s7492_s2 + $0x56c] ss:$16 sps:$4 sm:$0xff]  }
  0x81   :  { %1471 = vmatprep.subr.bf16.mxu1 %v5086_v16  ;;  %v5179_v15 = vld [vmem:[%s7492_s2 + $0x30c] ss:$16 sps:$4 sm:$0xff]  }
  0x82   :  { %1394 = vmatmul.mubr.bf16.vlgmr.msra.gmra.mxu0 %v6221_v18  ;;  %v5176_v16 = vld [vmem:[%s7492_s2 + $0x54c] ss:$16 sps:$4 sm:$0xff]  }
  0x83   :  { %1485 = vmatpush1.bf16.msra.mxu0 %v5087_v21  ;;  %1516 = vmatprep.mubr.bf16.mxu0 %v5953_v53  ;;  %v5104_v53 = vld [vmem:[%s7492_s2 + $0x4cc] ss:$16 sps:$4 sm:$0xff]   ;;  %v5174_v21 = vld [vmem:[%s7492_s2 + $0x548] ss:$16 sps:$4 sm:$0xff]  }
  0x84   :  { %1472 = vmatpush2.bf16.msra.mxu1 %v5084_v19  ;;  %1486 = vmatprep.subr.bf16.mxu0 %v5095_v22  ;;  %v5177_v19 = vld [vmem:[%s7492_s2 + $0x308] ss:$16 sps:$4 sm:$0xff]   ;;  %v5185_v22 = vld [vmem:[%s7492_s2 + $0x60c] ss:$16 sps:$4 sm:$0xff]  }
  0x85   :  { %1473 = vmatprep.subr.bf16.mxu1 %v5092_v23  ;;  %v5182_v23 = vld [vmem:[%s7492_s2 + $0x52c] ss:$16 sps:$4 sm:$0xff]  }
  0x87   :  { %1487 = vmatpush1.bf16.msra.mxu0 %v5093_v25  ;;  %v5180_v25 = vld [vmem:[%s7492_s2 + $0x528] ss:$16 sps:$4 sm:$0xff]  }
  0x88   :  { %1474 = vmatpush2.bf16.msra.mxu1 %v5090_v24  ;;  %1488 = vmatprep.subr.bf16.mxu0 %v5101_v26  ;;  %v5183_v24 = vld [vmem:[%s7492_s2 + $0x608] ss:$16 sps:$4 sm:$0xff]   ;;  %v5191_v26 = vld [vmem:[%s7494_s4 + $0x74] ss:$8 sps:$4 sm:$0xff]  }
  0x89   :  { %1525 = vmatprep.subr.bf16.mxu1 %v5098_v27  ;;  %v5188_v27 = vld [vmem:[%s7492_s2 + $0x50c] ss:$16 sps:$4 sm:$0xff]  }
  0x8b   :  { %1476 = vmatmul.mubr.bf16.vlgmr.msra.gmra.mxu1 %v6011_v8  ;;  %1489 = vmatpush1.bf16.msra.mxu0 %v5099_v29  ;;  %v5119_v8 = vld [vmem:[%s7492_s2 + $0x24c] ss:$16 sps:$4 sm:$0xff]   ;;  %v5189_v29 = vld [vmem:[%s7494_s4 + $0x70] ss:$8 sps:$4 sm:$0xff]  }
  0x8c   :  { %1526 = vmatpush1.bf16.msra.mxu1 %v5096_v28  ;;  %1490 = vmatprep.subr.bf16.mxu0 %v5107_v30  ;;  %v5186_v28 = vld [vmem:[%s7492_s2 + $0x508] ss:$16 sps:$4 sm:$0xff]   ;;  %v5197_v30 = vld [vmem:[%s7494_s4 + $0x54] ss:$8 sps:$4 sm:$0xff]  }
  0x8d   :  { %1527 = vmatprep.subr.bf16.mxu1 %v5104_v53  ;;  %1557 = vmatprep.mubr.bf16.mxu1 %v6110_v41  ;;  %v5122_v41 = vld [vmem:[%s7492_s2 + $0x46c] ss:$16 sps:$4 sm:$0xff]  }
  0x8e   :  { %v5194_v53 = vld [vmem:[%s7494_s4 + $0x64] ss:$8 sps:$4 sm:$0xff]  }
  0x8f   :  { %1491 = vmatpush1.bf16.msra.mxu0 %v5105_v31  ;;  %v5195_v31 = vld [vmem:[%s7494_s4 + $0x50] ss:$8 sps:$4 sm:$0xff]  }
  0x90   :  { %1528 = vmatpush1.bf16.msra.mxu1 %v5102_v32  ;;  %1492 = vmatprep.subr.bf16.mxu0 %v5113_v33  ;;  %v5239_v32 = vld [vmem:[%s7494_s4 + $0x174] ss:$8 sps:$4 sm:$0xff]   ;;  %v5242_v33 = vld [vmem:[%s7494_s4 + $0x164] ss:$8 sps:$4 sm:$0xff]  }
  0x91   :  { %1529 = vmatprep.subr.bf16.mxu1 %v5110_v34  ;;  %v5198_v34 = vld [vmem:[%s7494_s4 + $0x40] ss:$8 sps:$4 sm:$0xff]  }
  0x93   :  { %1493 = vmatpush1.bf16.msra.mxu0 %v5111_v36  ;;  %v5240_v36 = vld [vmem:[%s7494_s4 + $0x160] ss:$8 sps:$4 sm:$0xff]  }
  0x94   :  { %1530 = vmatpush1.bf16.msra.mxu1 %v5108_v35  ;;  %1494 = vmatprep.subr.bf16.mxu0 %v5119_v8  ;;  %v5203_v35 = vld [vmem:[%s7494_s4 + $0x34] ss:$8 sps:$4 sm:$0xff]  }
  0x95   :  { %1531 = vmatprep.subr.bf16.mxu1 %v5116_v37  ;;  %v5245_v8 = vld [vmem:[%s7494_s4 + $0x154] ss:$8 sps:$4 sm:$0xff]   ;;  %v5201_v37 = vld [vmem:[%s7494_s4 + $0x30] ss:$8 sps:$4 sm:$0xff]  }
  0x97   :  { %1495 = vmatpush1.bf16.msra.mxu0 %v5117_v38  ;;  %v5206_v38 = vld [vmem:[%s7494_s4 + $0x24] ss:$8 sps:$4 sm:$0xff]  }
  0x98   :  { %1532 = vmatpush1.bf16.msra.mxu1 %v5114_v39  ;;  %1496 = vmatprep.subr.bf16.mxu0 %v5125_v40  ;;  %v5243_v39 = vld [vmem:[%s7494_s4 + $0x150] ss:$8 sps:$4 sm:$0xff]   ;;  %v5248_v40 = vld [vmem:[%s7494_s4 + $0x144] ss:$8 sps:$4 sm:$0xff]  }
  0x99   :  { %1533 = vmatprep.subr.bf16.mxu1 %v5122_v41  ;;  %v5204_v41 = vld [vmem:[%s7494_s4 + $0x20] ss:$8 sps:$4 sm:$0xff]  }
  0x9b   :  { %1497 = vmatpush1.bf16.msra.mxu0 %v5123_v42  ;;  %v5209_v42 = vld [vmem:[%s7494_s4 + $0x14] ss:$8 sps:$4 sm:$0xff]  }
  0x9c   :  { %1534 = vmatpush1.bf16.msra.mxu1 %v5120_v43  ;;  %1498 = vmatprep.subr.bf16.mxu0 %v5131_v45  ;;  %v5246_v43 = vld [vmem:[%s7494_s4 + $0x140] ss:$8 sps:$4 sm:$0xff]   ;;  %v5207_v45 = vld [vmem:[%s7494_s4 + $0x10] ss:$8 sps:$4 sm:$0xff]  }
  0x9d   :  { %1535 = vmatprep.subr.bf16.mxu1 %v5128_v44  ;;  %v5251_v44 = vld [vmem:[%s7494_s4 + $0x134] ss:$8 sps:$4 sm:$0xff]  }
  0x9f   :  { %1499 = vmatpush1.bf16.msra.mxu0 %v5129_v46  ;;  %v5212_v46 = vld [vmem:[%s7494_s4 + $0x4] ss:$8 sps:$4 sm:$0xff]  }
  0xa0   :  { %1536 = vmatpush1.bf16.msra.mxu1 %v5126_v47  ;;  %1500 = vmatprep.subr.bf16.mxu0 %v5137_v48  ;;  %v5249_v47 = vld [vmem:[%s7494_s4 + $0x130] ss:$8 sps:$4 sm:$0xff]   ;;  %v5254_v48 = vld [vmem:[%s7494_s4 + $0x124] ss:$8 sps:$4 sm:$0xff]  }
  0xa1   :  { %1537 = vmatprep.subr.bf16.mxu1 %v5134_v49  ;;  %v5210_v49 = vld [vmem:[%s7494_s4] ss:$8 sps:$4 sm:$0xff]  }
  0xa3   :  { %1501 = vmatpush2.bf16.msra.mxu0 %v5135_v50  ;;  %v5215_v50 = vld [vmem:[%s7494_s4 + $0xf4] ss:$8 sps:$4 sm:$0xff]  }
  0xa4   :  { %1538 = vmatpush1.bf16.msra.mxu1 %v5132_v51  ;;  %1502 = vmatprep.subr.bf16.mxu0 %v5143_v52  ;;  %v5252_v51 = vld [vmem:[%s7494_s4 + $0x120] ss:$8 sps:$4 sm:$0xff]   ;;  %v5257_v52 = vld [vmem:[%s7494_s4 + $0x114] ss:$8 sps:$4 sm:$0xff]  }
  0xa5   :  { %1539 = vmatprep.subr.bf16.mxu1 %v5140_v54  ;;  %v5213_v54 = vld [vmem:[%s7494_s4 + $0xf0] ss:$8 sps:$4 sm:$0xff]  }
  0xa7   :  { %1503 = vmatpush2.bf16.msra.mxu0 %v5141_v55  ;;  %v5218_v55 = vld [vmem:[%s7494_s4 + $0xe4] ss:$8 sps:$4 sm:$0xff]  }
  0xa8   :  { %1540 = vmatpush1.bf16.msra.mxu1 %v5138_v56  ;;  %1504 = vmatprep.subr.bf16.mxu0 %v5149_v57  ;;  %v5255_v56 = vld [vmem:[%s7494_s4 + $0x110] ss:$8 sps:$4 sm:$0xff]   ;;  %v5260_v57 = vld [vmem:[%s7494_s4 + $0x104] ss:$8 sps:$4 sm:$0xff]  }
  0xa9   :  { %1541 = vmatprep.subr.bf16.mxu1 %v5146_v58  ;;  %v5216_v58 = vld [vmem:[%s7494_s4 + $0xe0] ss:$8 sps:$4 sm:$0xff]  }
  0xab   :  { %1505 = vmatpush2.bf16.msra.mxu0 %v5147_v59  ;;  %v5221_v59 = vld [vmem:[%s7494_s4 + $0xd4] ss:$8 sps:$4 sm:$0xff]  }
  0xac   :  { %1542 = vmatpush2.bf16.msra.mxu1 %v5144_v60  ;;  %1506 = vmatprep.subr.bf16.mxu0 %v5155_v61  ;;  %v5258_v60 = vld [vmem:[%s7494_s4 + $0x100] ss:$8 sps:$4 sm:$0xff]   ;;  %v5263_v61 = vld [vmem:[%s7494_s4 + $0x1f4] ss:$8 sps:$4 sm:$0xff]  }
  0xad   :  { %1543 = vmatprep.subr.bf16.mxu1 %v5152_v62  ;;  %v5219_v62 = vld [vmem:[%s7494_s4 + $0xd0] ss:$8 sps:$4 sm:$0xff]  }
  0xaf   :  { %1507 = vmatpush2.bf16.msra.mxu0 %v5153_v63  ;;  %v5224_v63 = vld [vmem:[%s7494_s4 + $0xc4] ss:$8 sps:$4 sm:$0xff]  }
  0xb0   :  { %1544 = vmatpush2.bf16.msra.mxu1 %v5150_v0  ;;  %1508 = vmatprep.subr.bf16.mxu0 %v5161_v1  ;;  %v5261_v0 = vld [vmem:[%s7494_s4 + $0x1f0] ss:$8 sps:$4 sm:$0xff]   ;;  %v5266_v1 = vld [vmem:[%s7494_s4 + $0x1e4] ss:$8 sps:$4 sm:$0xff]  }
  0xb1   :  { %1545 = vmatprep.subr.bf16.mxu1 %v5158_v2  ;;  %v5222_v2 = vld [vmem:[%s7494_s4 + $0xc0] ss:$8 sps:$4 sm:$0xff]  }
  0xb3   :  { %1509 = vmatpush2.bf16.msra.mxu0 %v5159_v3  ;;  %v5227_v3 = vld [vmem:[%s7494_s4 + $0xb4] ss:$8 sps:$4 sm:$0xff]  }
  0xb4   :  { %1546 = vmatpush2.bf16.msra.mxu1 %v5156_v4  ;;  %1510 = vmatprep.subr.bf16.mxu0 %v5167_v5  ;;  %v5264_v4 = vld [vmem:[%s7494_s4 + $0x1e0] ss:$8 sps:$4 sm:$0xff]   ;;  %v5269_v5 = vld [vmem:[%s7494_s4 + $0x1d4] ss:$8 sps:$4 sm:$0xff]  }
  0xb5   :  { %1547 = vmatprep.subr.bf16.mxu1 %v5164_v6  ;;  %v5225_v6 = vld [vmem:[%s7494_s4 + $0xb0] ss:$8 sps:$4 sm:$0xff]  }
  0xb7   :  { %1511 = vmatpush2.bf16.msra.mxu0 %v5165_v7  ;;  %v5230_v7 = vld [vmem:[%s7494_s4 + $0xa4] ss:$8 sps:$4 sm:$0xff]  }
  0xb8   :  { %1548 = vmatpush2.bf16.msra.mxu1 %v5162_v9  ;;  %1512 = vmatprep.subr.bf16.mxu0 %v5173_v11  ;;  %v5267_v9 = vld [vmem:[%s7494_s4 + $0x1d0] ss:$8 sps:$4 sm:$0xff]   ;;  %v5272_v11 = vld [vmem:[%s7494_s4 + $0x1c4] ss:$8 sps:$4 sm:$0xff]  }
  0xb9   :  { %1549 = vmatprep.subr.bf16.mxu1 %v5170_v12  ;;  %v5228_v12 = vld [vmem:[%s7494_s4 + $0xa0] ss:$8 sps:$4 sm:$0xff]  }
  0xbb   :  { %1513 = vmatpush2.bf16.msra.mxu0 %v5171_v13  ;;  %v5233_v13 = vld [vmem:[%s7494_s4 + $0x94] ss:$8 sps:$4 sm:$0xff]  }
  0xbc   :  { %1550 = vmatpush2.bf16.msra.mxu1 %v5168_v14  ;;  %1514 = vmatprep.subr.bf16.mxu0 %v5179_v15  ;;  %v5270_v14 = vld [vmem:[%s7494_s4 + $0x1c0] ss:$8 sps:$4 sm:$0xff]   ;;  %v5231_v15 = vld [vmem:[%s7494_s4 + $0x90] ss:$8 sps:$4 sm:$0xff]  }
  0xbd   :  { %1551 = vmatprep.subr.bf16.mxu1 %v5176_v16  ;;  %v5236_v16 = vld [vmem:[%s7494_s4 + $0x84] ss:$8 sps:$4 sm:$0xff]  }
  0xbf   :  { %1515 = vmatpush2.bf16.msra.mxu0 %v5177_v19  ;;  %v5234_v19 = vld [vmem:[%s7494_s4 + $0x80] ss:$8 sps:$4 sm:$0xff]  }
  0xc0   :  { %1552 = vmatpush2.bf16.msra.mxu1 %v5174_v21  ;;  %1580 = vmatprep.subr.bf16.mxu0 %v5185_v22 }
  0xc1   :  { %1553 = vmatprep.subr.bf16.mxu1 %v5182_v23 }
  0xc2   :  { %1517 = vmatmul.mubr.bf16.vlgmr.msra.gmra.mxu0 %v6016_v10  ;;  %v5192_v10 = vld [vmem:[%s7494_s4 + $0x60] ss:$8 sps:$4 sm:$0xff]  }
  0xc3   :  { %1581 = vmatpush1.bf16.msra.mxu0 %v5183_v24  ;;  %1598 = vmatprep.mubr.bf16.mxu0 %v5727_v17 }
  0xc4   :  { %1554 = vmatpush2.bf16.msra.mxu1 %v5180_v25  ;;  %2011 = vmatprep.subr.bf16.mxu0 %v5191_v26  ;;  %v5273_v25 = vld [vmem:[%s7494_s4 + $0x1b0] ss:$8 sps:$4 sm:$0xff]   ;;  %v5275_v26 = vld [vmem:[%s7494_s4 + $0x1b4] ss:$8 sps:$4 sm:$0xff]  }
  0xc5   :  { %1555 = vmatprep.subr.bf16.mxu1 %v5188_v27 }
  0xc8   :  { %1556 = vmatpush2.bf16.msra.mxu1 %v5186_v28 }
  0xc9   :  { %2052 = vmatprep.subr.bf16.mxu1 %v5239_v32  ;;  %v5279_v32 = vld [vmem:[%s7494_s4 + $0x190] ss:$8 sps:$4 sm:$0xff]  }
  0xca   :  { %4509 = vmatmul.mubr.msk.bf16.vlgmr.msra.gmra.mxu0 %vm1275_vm0, %v6045_v20  ;;  %v5200_v20 = vld [vmem:[%s7494_s4 + $0x44] ss:$8 sps:$4 sm:$0xff]  }
  0xcb   :  { %1558 = vmatmul.mubr.bf16.vlgmr.msra.gmra.mxu1 %v6221_v18  ;;  %2012 = vmatpush1.bf16.msra.mxu0 %v5189_v29  ;;  %v5237_v18 = vld [vmem:[%s7494_s4 + $0x170] ss:$8 sps:$4 sm:$0xff]  }
  0xcc   :  { %2013 = vmatprep.subr.bf16.mxu0 %v5194_v53  ;;  %2053 = vmatpush1.bf16.msra.mxu1 %v5237_v18  ;;  %v5281_v18 = vld [vmem:[%s7494_s4 + $0x194] ss:$8 sps:$4 sm:$0xff]  }
  0xcd   :  { %2054 = vmatprep.subr.bf16.mxu1 %v5242_v33 }
  0xcf   :  { %2014 = vmatpush1.bf16.msra.mxu0 %v5192_v10  ;;  %v5278_v10 = vld [vmem:[%s7494_s4 + $0x1a4] ss:$8 sps:$4 sm:$0xff]  }
  0xd0   :  { %2015 = vmatprep.subr.bf16.mxu0 %v5197_v30  ;;  %2055 = vmatpush1.bf16.msra.mxu1 %v5240_v36  ;;  %v5276_v30 = vld [vmem:[%s7494_s4 + $0x1a0] ss:$8 sps:$4 sm:$0xff]  }
  0xd1   :  { %2056 = vmatprep.subr.bf16.mxu1 %v5245_v8  ;;  %v5282_v36 = vld [vmem:[%s7494_s4 + $0x180] ss:$8 sps:$4 sm:$0xff]   ;;  %v275_v8 = vlaneseq }
  0xd3   :  { %2016 = vmatpush1.bf16.msra.mxu0 %v5195_v31 }
  0xd4   :  { %2017 = vmatprep.subr.bf16.mxu0 %v5200_v20  ;;  %2057 = vmatpush1.bf16.msra.mxu1 %v5243_v39  ;;  %v273_v39 = vld [vmem:[%s7493_s3] sm:$0xf] }
  0xd5   :  { %2058 = vmatprep.subr.bf16.mxu1 %v5248_v40 }
  0xd7   :  { %2018 = vmatpush1.bf16.msra.mxu0 %v5198_v34 }
  0xd8   :  { %2019 = vmatprep.subr.bf16.mxu0 %v5203_v35  ;;  %2059 = vmatpush1.bf16.msra.mxu1 %v5246_v43  ;;  %v5284_v35 = vld [vmem:[%s7494_s4 + $0x184] ss:$8 sps:$4 sm:$0xff]  }
  0xd9   :  { %2060 = vmatprep.subr.bf16.mxu1 %v5251_v44 }
  0xdb   :  { %2020 = vmatpush1.bf16.msra.mxu0 %v5201_v37  ;;  %v6628_v37 = vshrl.u32 %v275_v8, 7  ;;  %v5302_v8 = vld [vmem:[%s7496_s6 + $0xac] ss:$16 sps:$4 sm:$0xff]  }
  0xdc   :  { %2021 = vmatprep.subr.bf16.mxu0 %v5206_v38  ;;  %2061 = vmatpush1.bf16.msra.mxu1 %v5249_v47 }
  0xdd   :  { %2062 = vmatprep.subr.bf16.mxu1 %v5254_v48  ;;  %v6631_v38 = vsub.s32 0, %v6628_v37  ;;  %v6637_v40 = vsub.s32 1, %v6628_v37 }
  0xdf   :  { %2022 = vmatpush1.bf16.msra.mxu0 %v5204_v41  ;;  %v278_v41 = vrot.slane %v273_v39, %v6631_v38 }
  0xe0   :  { %2023 = vmatprep.subr.bf16.mxu0 %v5209_v42  ;;  %2063 = vmatpush1.bf16.msra.mxu1 %v5252_v51  ;;  %v282_v42 = vrot.slane %v273_v39, %v6637_v40 }
  0xe1   :  { %2064 = vmatprep.subr.bf16.mxu1 %v5257_v52 }
  0xe3   :  { %2024 = vmatpush1.bf16.msra.mxu0 %v5207_v45 }
  0xe4   :  { %2025 = vmatprep.subr.bf16.mxu0 %v5212_v46  ;;  %2065 = vmatpush1.bf16.msra.mxu1 %v5255_v56 }
  0xe5   :  { %2066 = vmatprep.subr.bf16.mxu1 %v5260_v57 }
  0xe7   :  { %2026 = vmatpush1.bf16.msra.mxu0 %v5210_v49 }
  0xe8   :  { %2027 = vmatprep.subr.bf16.mxu0 %v5215_v50  ;;  %2067 = vmatpush1.bf16.msra.mxu1 %v5258_v60 }
  0xe9   :  { %2068 = vmatprep.subr.bf16.mxu1 %v5263_v61 }
  0xeb   :  { %2028 = vmatpush2.bf16.msra.mxu0 %v5213_v54 }
  0xec   :  { %2029 = vmatprep.subr.bf16.mxu0 %v5218_v55  ;;  %2069 = vmatpush2.bf16.msra.mxu1 %v5261_v0  ;;  %v6643_v0 = vsub.s32 2, %v6628_v37 }
  0xed   :  { %2070 = vmatprep.subr.bf16.mxu1 %v5266_v1  ;;  %v6646_v1 = vsub.s32 3, %v6628_v37 }
  0xef   :  { %2030 = vmatpush2.bf16.msra.mxu0 %v5216_v58 }
  0xf0   :  { %2031 = vmatprep.subr.bf16.mxu0 %v5221_v59  ;;  %2071 = vmatpush2.bf16.msra.mxu1 %v5264_v4 }
  0xf1   :  { %2072 = vmatprep.subr.bf16.mxu1 %v5269_v5  ;;  %v290_v5 = vrot.slane %v273_v39, %v6646_v1 }
  0xf3   :  { %2032 = vmatpush2.bf16.msra.mxu0 %v5219_v62 }
  0xf4   :  { %2033 = vmatprep.subr.bf16.mxu0 %v5224_v63  ;;  %2073 = vmatpush2.bf16.msra.mxu1 %v5267_v9 }
  0xf5   :  { %2074 = vmatprep.subr.bf16.mxu1 %v5272_v11 }
  0xf7   :  { %2034 = vmatpush2.bf16.msra.mxu0 %v5222_v2 }
  0xf8   :  { %2035 = vmatprep.subr.bf16.mxu0 %v5227_v3  ;;  %2075 = vmatpush2.bf16.msra.mxu1 %v5270_v14  ;;  %v286_v3 = vrot.slane %v273_v39, %v6643_v0  ;;  %v5297_v39 = vld [vmem:[%s7496_s6 + $0xa0] ss:$16 sps:$4 sm:$0xff]  }
  0xf9   :  { %2076 = vmatprep.subr.bf16.mxu1 %v5275_v26 }
  0xfb   :  { %2036 = vmatpush2.bf16.msra.mxu0 %v5225_v6 }
  0xfc   :  { %2037 = vmatprep.subr.bf16.mxu0 %v5230_v7  ;;  %2077 = vmatpush2.bf16.msra.mxu1 %v5273_v25 }
  0xfd   :  { %2078 = vmatprep.subr.bf16.mxu1 %v5278_v10 }
  0xff   :  { %2038 = vmatpush2.bf16.msra.mxu0 %v5228_v12 }
 0x100   :  { %2039 = vmatprep.subr.bf16.mxu0 %v5233_v13  ;;  %2079 = vmatpush2.bf16.msra.mxu1 %v5276_v30  ;;  %v5285_v30 = vld [vmem:[%s7496_s6 + $0xe0] ss:$16 sps:$4 sm:$0xff]  }
 0x101   :  { %2080 = vmatprep.subr.bf16.mxu1 %v5281_v18 }
 0x102   :  { %v1313_v21 = vpop.f32.mrf.mxu0 }
 0x103   :  { %v1354_v22 = vpop.f32.mrf.mxu1  ;;  %2040 = vmatpush2.bf16.msra.mxu0 %v5231_v15  ;;  %v1314_v43 = vadd.f32 %v1313_v21, %v278_v41  ;;  %v5300_v41 = vld [vmem:[%s7496_s6 + $0xa8] ss:$16 sps:$4 sm:$0xff]  }
 0x104   :  { %v1315_v23 = vpop.f32.mrf.mxu0  ;;  %2041 = vmatprep.subr.bf16.mxu0 %v5236_v16  ;;  %2081 = vmatpush2.bf16.msra.mxu1 %v5279_v32  ;;  %v5290_v32 = vld [vmem:[%s7496_s6 + $0xec] ss:$16 sps:$4 sm:$0xff]  }
 0x105   :  { %v1356_v24 = vpop.f32.mrf.mxu1  ;;  %2082 = vmatprep.subr.bf16.mxu1 %v5284_v35  ;;  %v1316_v44 = vadd.f32 %v1315_v23, %v282_v42  ;;  %v1355_v45 = vadd.f32 %v1354_v22, %v1314_v43  ;;  %v5291_v35 = vld [vmem:[%s7496_s6 + $0xc0] ss:$16 sps:$4 sm:$0xff]   ;;  %v5305_v42 = vld [vmem:[%s7496_s6 + $0x84] ss:$16 sps:$4 sm:$0xff]   ;;  %v5308_v43 = vld [vmem:[%s7496_s6 + $0x8c] ss:$16 sps:$4 sm:$0xff]  }
 0x106   :  { %v1317_v27 = vpop.f32.mrf.mxu0 }
 0x107   :  { %v1358_v28 = vpop.f32.mrf.mxu1  ;;  %2042 = vmatpush2.bf16.msra.mxu0 %v5234_v19  ;;  %v1357_v47 = vadd.f32 %v1356_v24, %v1316_v44  ;;  %v5303_v44 = vld [vmem:[%s7496_s6 + $0x80] ss:$16 sps:$4 sm:$0xff]  }
 0x108   :  { %v1318_v29 = vpop.f32.mrf.mxu0  ;;  %2083 = vmatpush2.bf16.msra.mxu1 %v5282_v36  ;;  %v5294_v36 = vld [vmem:[%s7496_s6 + $0xc8] ss:$16 sps:$4 sm:$0xff]  }
 0x109   :  { %v1359_v53 = vpop.f32.mrf.mxu1  ;;  %2355 = vmatprep.subr.bf16.mxu1 %v5290_v32  ;;  %v5339_v32 = vld [vmem:[%s7498_s8 + $0x150] ss:$28 sps:$4 sm:$0xff]  }
 0x10b   :  { %v1436_v31 = vpop.f32.mrf.mxu1 }
 0x10d   :  { %v1438_v20 = vpop.f32.mrf.mxu1 }
 0x10f   :  { %v1440_v33 = vpop.f32.mrf.mxu1 }
 0x110   :  { %v5293_v33 = vld [vmem:[%s7496_s6 + $0xc4] ss:$16 sps:$4 sm:$0xff]  }
 0x111   :  { %v1441_v34 = vpop.f32.mrf.mxu1 }
 0x112   :  { %v5296_v34 = vld [vmem:[%s7496_s6 + $0xcc] ss:$16 sps:$4 sm:$0xff]  }
 0x142   :  { %v1395_v46 = vpop.f32.mrf.mxu0 }
 0x143   :  { %v1396_v48 = vadd.f32 %v1395_v46, %v1355_v45  ;;  %v5306_v45 = vld [vmem:[%s7496_s6 + $0x88] ss:$16 sps:$4 sm:$0xff]   ;;  %v5311_v46 = vld [vmem:[%s7496_s6 + $0x64] ss:$16 sps:$4 sm:$0xff]  }
 0x144   :  { %v1397_v49 = vpop.f32.mrf.mxu0 }
 0x145   :  { %v1437_v50 = vadd.f32 %v1436_v31, %v1396_v48  ;;  %v1398_v51 = vadd.f32 %v1397_v49, %v1357_v47  ;;  %v5287_v31 = vld [vmem:[%s7496_s6 + $0xe4] ss:$16 sps:$4 sm:$0xff]   ;;  %v5309_v47 = vld [vmem:[%s7496_s6 + $0x60] ss:$16 sps:$4 sm:$0xff]   ;;  %v5312_v48 = vld [vmem:[%s7496_s6 + $0x68] ss:$16 sps:$4 sm:$0xff]  }
 0x146   :  { %v1399_v52 = vpop.f32.mrf.mxu0  ;;  %2314 = vmatprep.subr.bf16.mxu0 %v5287_v31  ;;  %v5314_v49 = vld [vmem:[%s7496_s6 + $0x6c] ss:$16 sps:$4 sm:$0xff]  }
 0x147   :  { %v1439_v54 = vadd.f32 %v1438_v20, %v1398_v51  ;;  %v1607_v55 = vmax.f32 %v1437_v50, 0.0  ;;  %v5288_v20 = vld [vmem:[%s7496_s6 + $0xe8] ss:$16 sps:$4 sm:$0xff]   ;;  %v5317_v50 = vld [vmem:[%s7496_s6 + $0x44] ss:$16 sps:$4 sm:$0xff]  }
 0x148   :  { %v1400_v56 = vpop.f32.mrf.mxu0  ;;  %v5320_v51 = vld [vmem:[%s7496_s6 + $0x4c] ss:$16 sps:$4 sm:$0xff]   ;;  %v5315_v52 = vld [vmem:[%s7496_s6 + $0x40] ss:$16 sps:$4 sm:$0xff]  }
 0x149   :  { %v1608_v57 = vmax.f32 %v1439_v54, 0.0  ;;  %v1611_v60 = vpack.c.bf16 %v1607_v55, %v1607_v55  ;;  %v5318_v54 = vld [vmem:[%s7496_s6 + $0x48] ss:$16 sps:$4 sm:$0xff]   ;;  %v5323_v55 = vld [vmem:[%s7496_s6 + $0x24] ss:$16 sps:$4 sm:$0xff]  }
 0x14a   :  { %v5326_v56 = vld [vmem:[%s7496_s6 + $0x2c] ss:$16 sps:$4 sm:$0xff]  }
 0x14b   :  { %v1612_v58 = vpack.c.bf16 %v1608_v57, %v1608_v57  ;;  %v1477_v59 = vpop.f32.mrf.mxu1  ;;  %v5321_v57 = vld [vmem:[%s7496_s6 + $0x20] ss:$16 sps:$4 sm:$0xff]  }
 0x14c   :  { %v1478_v7 = vadd.f32 %v1477_v59, %v286_v3  ;;  %v5329_v59 = vld [vmem:[%s7496_s6 + $0x4] ss:$16 sps:$4 sm:$0xff]  }
 0x14d   :  { %v1479_v61 = vpop.f32.mrf.mxu1  ;;  %2043 = vmatprep.mubr.bf16.mxu0 %v1612_v58  ;;  %v5324_v58 = vld [vmem:[%s7496_s6 + $0x28] ss:$16 sps:$4 sm:$0xff]  }
 0x14e   :  { %2044 = vmatmul.mubr.bf16.vlgmr.msra.gmra.mxu0 %v1611_v60  ;;  %v1480_v11 = vadd.f32 %v1479_v61, %v290_v5  ;;  %v5332_v60 = vld [vmem:[%s7496_s6 + $0xc] ss:$16 sps:$4 sm:$0xff]   ;;  %v5327_v61 = vld [vmem:[%s7496_s6] ss:$16 sps:$4 sm:$0xff]  }
 0x14f   :  { %v1481_v62 = vpop.f32.mrf.mxu1  ;;  %2346 = vmatprep.mubr.bf16.mxu0 %v5727_v17  ;;  %2315 = vmatpush1.bf16.msra.mxu0 %v5285_v30  ;;  %v5336_v30 = vld [vmem:[%s7498_s8 + $0x508] ss:$28 sps:$4 sm:$0xff]  }
 0x150   :  { %2316 = vmatprep.subr.bf16.mxu0 %v5293_v33  ;;  %v5330_v62 = vld [vmem:[%s7496_s6 + $0x8] ss:$16 sps:$4 sm:$0xff]   ;;  %v5342_v33 = vld [vmem:[%s7498_s8 + $0x4d0] ss:$28 sps:$4 sm:$0xff]  }
 0x151   :  { %v1482_v63 = vpop.f32.mrf.mxu1 }
 0x152   :  { %v5335_v63 = vld [vmem:[%s7498_s8 + $0x18c] ss:$28 sps:$4 sm:$0xff]  }
 0x153   :  { %2317 = vmatpush1.bf16.msra.mxu0 %v5291_v35  ;;  %v5350_v35 = vld [vmem:[%s7498_s8 + $0x49c] ss:$28 sps:$4 sm:$0xff]  }
 0x182   :  { %v1518_v2 = vpop.f32.mrf.mxu0 }
 0x183   :  { %v1519_v12 = vadd.f32 %v1518_v2, %v1478_v7  ;;  %v5338_v2 = vld [vmem:[%s7498_s8 + $0x50c] ss:$28 sps:$4 sm:$0xff]   ;;  %v1679_v7 = vld [vmem:[%s7495_s5] sm:$0x3] }
 0x184   :  { %v1520_v4 = vpop.f32.mrf.mxu0 }
 0x185   :  { %v1521_v15 = vadd.f32 %v1520_v4, %v1480_v11  ;;  %v1688_v11 = vrot.slane %v1679_v7, %v6637_v40 }
 0x186   :  { %v1522_v6 = vpop.f32.mrf.mxu0 }
 0x188   :  { %v1523_v9 = vpop.f32.mrf.mxu0 }
 0x189   :  { %v1684_v9 = vrot.slane %v1679_v7, %v6631_v38  ;;  %v5398_v7 = vld [vmem:[%s7498_s8 + $0x65c] ss:$28 sps:$4 sm:$0xff]  }
 0x18a   :  { %v1600_v13 = vpop.f32.mrf.mxu0 }
 0x18b   :  { %v1559_v14 = vpop.f32.mrf.mxu1 }
 0x18c   :  { %v1560_v16 = vadd.f32 %v1559_v14, %v1519_v12  ;;  %v1602_v19 = vpop.f32.mrf.mxu0 }
 0x18d   :  { %v1561_v21 = vpop.f32.mrf.mxu1 }
 0x18e   :  { %v1601_v22 = vadd.f32 %v1600_v13, %v1560_v16  ;;  %v1562_v23 = vadd.f32 %v1561_v21, %v1521_v15  ;;  %v1604_v24 = vpop.f32.mrf.mxu0 }
 0x18f   :  { %v1563_v25 = vpop.f32.mrf.mxu1 }
 0x190   :  { %v1603_v26 = vadd.f32 %v1602_v19, %v1562_v23  ;;  %v1605_v27 = vpop.f32.mrf.mxu0  ;;  %v1609_v28 = vmax.f32 %v1601_v22, 0.0 }
 0x191   :  { %v1564_v29 = vpop.f32.mrf.mxu1  ;;  %v2093_v27 = vld [vmem:[%s7491_s1] sm:$0xff] }
 0x192   :  { %v1610_v53 = vmax.f32 %v1603_v26, 0.0  ;;  %v1613_v18 = vpack.c.bf16 %v1609_v28, %v1609_v28 }
 0x194   :  { %v1614_v10 = vpack.c.bf16 %v1610_v53, %v1610_v53 }
 0x196   :  { %2084 = vmatprep.mubr.bf16.mxu1 %v1614_v10  ;;  %v5333_v10 = vld [vmem:[%s7498_s8 + $0x188] ss:$28 sps:$4 sm:$0xff]  }
 0x197   :  { %2085 = vmatmul.mubr.bf16.vlgmr.msra.gmra.mxu1 %v1613_v18  ;;  %v5344_v18 = vld [vmem:[%s7498_s8 + $0x4d4] ss:$28 sps:$4 sm:$0xff]  }
 0x198   :  { %2356 = vmatpush1.bf16.msra.mxu1 %v5288_v20  ;;  %2387 = vmatprep.mubr.bf16.mxu1 %v5727_v17  ;;  %v5299_v17 = vld [vmem:[%s7496_s6 + $0xa4] ss:$16 sps:$4 sm:$0xff]  }
 0x199   :  { %2357 = vmatprep.subr.bf16.mxu1 %v5296_v34  ;;  %2318 = vmatprep.subr.bf16.mxu0 %v5299_v17  ;;  %v5341_v20 = vld [vmem:[%s7498_s8 + $0x154] ss:$28 sps:$4 sm:$0xff]   ;;  %v5347_v34 = vld [vmem:[%s7498_s8 + $0x11c] ss:$28 sps:$4 sm:$0xff]  }
 0x19a   :  { %2319 = vmatpush1.bf16.msra.mxu0 %v5297_v39  ;;  %v5348_v17 = vld [vmem:[%s7498_s8 + $0x498] ss:$28 sps:$4 sm:$0xff]   ;;  %v5356_v39 = vld [vmem:[%s7498_s8 + $0x464] ss:$28 sps:$4 sm:$0xff]  }
 0x19b   :  { %2320 = vmatprep.subr.bf16.mxu0 %v5305_v42  ;;  %v5354_v42 = vld [vmem:[%s7498_s8 + $0x460] ss:$28 sps:$4 sm:$0xff]  }
 0x19c   :  { %2358 = vmatpush1.bf16.msra.mxu1 %v5294_v36  ;;  %v5345_v36 = vld [vmem:[%s7498_s8 + $0x118] ss:$28 sps:$4 sm:$0xff]  }
 0x19d   :  { %2359 = vmatprep.subr.bf16.mxu1 %v5302_v8  ;;  %v5353_v8 = vld [vmem:[%s7498_s8 + $0xe4] ss:$28 sps:$4 sm:$0xff]  }
 0x19e   :  { %2321 = vmatpush1.bf16.msra.mxu0 %v5303_v44  ;;  %v5362_v44 = vld [vmem:[%s7498_s8 + $0x42c] ss:$28 sps:$4 sm:$0xff]  }
 0x19f   :  { %2322 = vmatprep.subr.bf16.mxu0 %v5311_v46  ;;  %v5360_v46 = vld [vmem:[%s7498_s8 + $0x428] ss:$28 sps:$4 sm:$0xff]  }
 0x1a0   :  { %2360 = vmatpush1.bf16.msra.mxu1 %v5300_v41  ;;  %v5351_v41 = vld [vmem:[%s7498_s8 + $0xe0] ss:$28 sps:$4 sm:$0xff]  }
 0x1a1   :  { %2361 = vmatprep.subr.bf16.mxu1 %v5308_v43  ;;  %v5359_v43 = vld [vmem:[%s7498_s8 + $0xac] ss:$28 sps:$4 sm:$0xff]  }
 0x1a2   :  { %2323 = vmatpush1.bf16.msra.mxu0 %v5309_v47  ;;  %v5365_v47 = vld [vmem:[%s7498_s8 + $0x74] ss:$28 sps:$4 sm:$0xff]  }
 0x1a3   :  { %2324 = vmatprep.subr.bf16.mxu0 %v5317_v50  ;;  %v5366_v50 = vld [vmem:[%s7498_s8 + $0x3f0] ss:$28 sps:$4 sm:$0xff]  }
 0x1a4   :  { %2362 = vmatpush1.bf16.msra.mxu1 %v5306_v45  ;;  %v5357_v45 = vld [vmem:[%s7498_s8 + $0xa8] ss:$28 sps:$4 sm:$0xff]  }
 0x1a5   :  { %2363 = vmatprep.subr.bf16.mxu1 %v5314_v49  ;;  %v5363_v49 = vld [vmem:[%s7498_s8 + $0x70] ss:$28 sps:$4 sm:$0xff]  }
 0x1a6   :  { %2325 = vmatpush1.bf16.msra.mxu0 %v5315_v52  ;;  %v5374_v52 = vld [vmem:[%s7498_s8 + $0x3bc] ss:$28 sps:$4 sm:$0xff]  }
 0x1a7   :  { %2326 = vmatprep.subr.bf16.mxu0 %v5323_v55  ;;  %v5372_v55 = vld [vmem:[%s7498_s8 + $0x3b8] ss:$28 sps:$4 sm:$0xff]  }
 0x1a8   :  { %2364 = vmatpush1.bf16.msra.mxu1 %v5312_v48  ;;  %v5368_v48 = vld [vmem:[%s7498_s8 + $0x3f4] ss:$28 sps:$4 sm:$0xff]  }
 0x1a9   :  { %2365 = vmatprep.subr.bf16.mxu1 %v5320_v51  ;;  %v5371_v51 = vld [vmem:[%s7498_s8 + $0x3c] ss:$28 sps:$4 sm:$0xff]  }
 0x1aa   :  { %2327 = vmatpush1.bf16.msra.mxu0 %v5321_v57  ;;  %v5380_v57 = vld [vmem:[%s7498_s8 + $0x384] ss:$28 sps:$4 sm:$0xff]  }
 0x1ab   :  { %2328 = vmatprep.subr.bf16.mxu0 %v5329_v59  ;;  %v5378_v59 = vld [vmem:[%s7498_s8 + $0x380] ss:$28 sps:$4 sm:$0xff]  }
 0x1ac   :  { %2366 = vmatpush1.bf16.msra.mxu1 %v5318_v54  ;;  %v5369_v54 = vld [vmem:[%s7498_s8 + $0x38] ss:$28 sps:$4 sm:$0xff]  }
 0x1ad   :  { %2367 = vmatprep.subr.bf16.mxu1 %v5326_v56  ;;  %v5377_v56 = vld [vmem:[%s7498_s8 + $0x4] ss:$28 sps:$4 sm:$0xff]  }
 0x1ae   :  { %2329 = vmatpush1.bf16.msra.mxu0 %v5327_v61  ;;  %v5386_v61 = vld [vmem:[%s7498_s8 + $0x6cc] ss:$28 sps:$4 sm:$0xff]  }
 0x1af   :  { %3849 = vmatprep.subr.bf16.mxu0 %v5335_v63  ;;  %v5384_v63 = vld [vmem:[%s7498_s8 + $0x6c8] ss:$28 sps:$4 sm:$0xff]  }
 0x1b0   :  { %2368 = vmatpush1.bf16.msra.mxu1 %v5324_v58  ;;  %v5375_v58 = vld [vmem:[%s7498_s8] ss:$28 sps:$4 sm:$0xff]  }
 0x1b1   :  { %2369 = vmatprep.subr.bf16.mxu1 %v5332_v60  ;;  %v5383_v60 = vld [vmem:[%s7498_s8 + $0x34c] ss:$28 sps:$4 sm:$0xff]  }
 0x1b4   :  { %2370 = vmatpush1.bf16.msra.mxu1 %v5330_v62  ;;  %v5381_v62 = vld [vmem:[%s7498_s8 + $0x348] ss:$28 sps:$4 sm:$0xff]  }
 0x1b5   :  { %3890 = vmatprep.subr.bf16.mxu1 %v5338_v2  ;;  %v5389_v2 = vld [vmem:[%s7498_s8 + $0x314] ss:$28 sps:$4 sm:$0xff]  }
 0x20e   :  { %v2045_v3 = vpop.f32.mrf.mxu0 }
 0x20f   :  { %v2046_v13 = vadd.f32 %v2045_v3, %v1684_v9  ;;  %v5392_v3 = vld [vmem:[%s7498_s8 + $0x694] ss:$28 sps:$4 sm:$0xff]  }
 0x210   :  { %v2047_v4 = vpop.f32.mrf.mxu0  ;;  %v5393_v9 = vld [vmem:[%s7498_s8 + $0x2d8] ss:$28 sps:$4 sm:$0xff]  }
 0x211   :  { %v2048_v14 = vadd.f32 %v2047_v4, %v1688_v11  ;;  %v5387_v4 = vld [vmem:[%s7498_s8 + $0x310] ss:$28 sps:$4 sm:$0xff]   ;;  %v5396_v11 = vld [vmem:[%s7498_s8 + $0x658] ss:$28 sps:$4 sm:$0xff]  }
 0x212   :  { %v2049_v5 = vpop.f32.mrf.mxu0 }
 0x213   :  { %v5390_v5 = vld [vmem:[%s7498_s8 + $0x690] ss:$28 sps:$4 sm:$0xff]  }
 0x214   :  { %v2050_v6 = vpop.f32.mrf.mxu0 }
 0x215   :  { %v5395_v6 = vld [vmem:[%s7498_s8 + $0x2dc] ss:$28 sps:$4 sm:$0xff]  }
 0x257   :  { %v2086_v12 = vpop.f32.mrf.mxu1 }
 0x258   :  { %v2087_v16 = vadd.f32 %v2086_v12, %v2046_v13  ;;  %v5401_v12 = vld [vmem:[%s7498_s8 + $0x2a4] ss:$28 sps:$4 sm:$0xff]  }
 0x259   :  { %v2088_v15 = vpop.f32.mrf.mxu1  ;;  %v5404_v13 = vld [vmem:[%s7498_s8 + $0x624] ss:$28 sps:$4 sm:$0xff]  }
 0x25a   :  { %v2089_v19 = vadd.f32 %v2088_v15, %v2048_v14  ;;  %v5399_v14 = vld [vmem:[%s7498_s8 + $0x2a0] ss:$28 sps:$4 sm:$0xff]  }
 0x25b   :  { %v2090_v21 = vpop.f32.mrf.mxu1  ;;  %v5402_v15 = vld [vmem:[%s7498_s8 + $0x620] ss:$28 sps:$4 sm:$0xff]  }
 0x25c   :  { %v2094_v22 = vmul.f32 0.5, %v2089_v19  ;;  %v4274_v23 = vcombine.low %v2087_v16, %v2089_v19  ;;  %v4275_v24 = vcombine.high %v2087_v16, %v2089_v19  ;;  %v5410_v19 = vld [vmem:[%s7498_s8 + $0x5ec] ss:$28 sps:$4 sm:$0xff]  }
 0x25d   :  { %v2091_v25 = vpop.f32.mrf.mxu1  ;;  %v5405_v21 = vld [vmem:[%s7498_s8 + $0x268] ss:$28 sps:$4 sm:$0xff]  }
 0x25e   :  { %v2095_v26 = vmul.f32 1.442695, %v2094_v22  ;;  %4278 = vst [vmem:[#allocation4] sm:$0xff] %v4274_v23  ;;  %4279 = vst [vmem:[#allocation4 + $0x8] sm:$0xff] %v4275_v24  ;;  %v5408_v22 = vld [vmem:[%s7498_s8 + $0x5e8] ss:$28 sps:$4 sm:$0xff]  }
 0x25f   :  { %v5413_v23 = vld [vmem:[%s7498_s8 + $0x234] ss:$28 sps:$4 sm:$0xff]  }
 0x260   :  { %5653 = vpow2.f32 %v2095_v26  ;;  %v5416_v24 = vld [vmem:[%s7498_s8 + $0x5b4] ss:$28 sps:$4 sm:$0xff]  }
 0x261   :  { %v5411_v25 = vld [vmem:[%s7498_s8 + $0x230] ss:$28 sps:$4 sm:$0xff]  }
 0x262   :  { %v5414_v26 = vld [vmem:[%s7498_s8 + $0x5b0] ss:$28 sps:$4 sm:$0xff]  }
 0x26d   :  { %v5654_v28 = vpop.eup %5653 }
 0x26e   :  { %v2097_v29 = vmul.f32 %v5654_v28, %v2093_v27  ;;  %v5419_v27 = vld [vmem:[%s7498_s8 + $0x1fc] ss:$28 sps:$4 sm:$0xff]  }
 0x26f   :  { %v5422_v28 = vld [vmem:[%s7498_s8 + $0x57c] ss:$28 sps:$4 sm:$0xff]  }
 0x270   :  { %v2098_v53 = vadd.f32 %v2097_v29, %v2087_v16  ;;  %v5407_v16 = vld [vmem:[%s7498_s8 + $0x26c] ss:$28 sps:$4 sm:$0xff]   ;;  %v5417_v29 = vld [vmem:[%s7498_s8 + $0x1f8] ss:$28 sps:$4 sm:$0xff]  }
 0x272   :  { %v2099_v31 = vpack.c.bf16 %v2098_v53, %v2098_v53  ;;  %v5420_v53 = vld [vmem:[%s7498_s8 + $0x578] ss:$28 sps:$4 sm:$0xff]  }
 0x274   :  { %2347 = vmatmul.mubr.bf16.vlgmr.msra.gmra.mxu0 %v2099_v31  ;;  %2388 = vmatmul.mubr.bf16.vlgmr.msra.gmra.mxu1 %v2099_v31  ;;  %v5423_v31 = vld [vmem:[%s7498_s8 + $0x1c0] ss:$28 sps:$4 sm:$0xff]  }
 0x275   :  { %3850 = vmatpush1.bf16.msra.mxu0 %v5333_v10  ;;  %3891 = vmatpush1.bf16.msra.mxu1 %v5336_v30  ;;  %v5425_v10 = vld [vmem:[%s7498_s8 + $0x1c4] ss:$28 sps:$4 sm:$0xff]  }
 0x276   :  { %3851 = vmatprep.subr.bf16.mxu0 %v5341_v20  ;;  %3892 = vmatprep.subr.bf16.mxu1 %v5344_v18  ;;  %v5428_v30 = vld [vmem:[%s7498_s8 + $0x544] ss:$28 sps:$4 sm:$0xff]   ;;  %v5431_v18 = vld [vmem:[%s7498_s8 + $0x194] ss:$28 sps:$4 sm:$0xff]  }
 0x277   :  { %v5426_v20 = vld [vmem:[%s7498_s8 + $0x540] ss:$28 sps:$4 sm:$0xff]  }
 0x279   :  { %3852 = vmatpush1.bf16.msra.mxu0 %v5339_v32  ;;  %3893 = vmatpush1.bf16.msra.mxu1 %v5342_v33  ;;  %v5434_v32 = vld [vmem:[%s7498_s8 + $0x514] ss:$28 sps:$4 sm:$0xff]   ;;  %v2132_v33 = vld [vmem:[%s7497_s7] sm:$0xf] }
 0x27a   :  { %3853 = vmatprep.subr.bf16.mxu0 %v5347_v34  ;;  %3894 = vmatprep.subr.bf16.mxu1 %v5350_v35  ;;  %v2137_v34 = vrot.slane %v2132_v33, %v6631_v38  ;;  %v2145_v35 = vrot.slane %v2132_v33, %v6643_v0 }
 0x27d   :  { %3854 = vmatpush1.bf16.msra.mxu0 %v5345_v36  ;;  %3895 = vmatpush1.bf16.msra.mxu1 %v5348_v17  ;;  %v2141_v36 = vrot.slane %v2132_v33, %v6637_v40  ;;  %v2149_v17 = vrot.slane %v2132_v33, %v6646_v1  ;;  %v5485_v33 = vld [vmem:[%s7498_s8 + $0x31c] ss:$28 sps:$4 sm:$0xff]  }
 0x27e   :  { %3855 = vmatprep.subr.bf16.mxu0 %v5353_v8  ;;  %3896 = vmatprep.subr.bf16.mxu1 %v5356_v39 }
 0x281   :  { %3856 = vmatpush1.bf16.msra.mxu0 %v5351_v41  ;;  %3897 = vmatpush1.bf16.msra.mxu1 %v5354_v42 }
 0x282   :  { %3857 = vmatprep.subr.bf16.mxu0 %v5359_v43  ;;  %3898 = vmatprep.subr.bf16.mxu1 %v5362_v44 }
 0x285   :  { %3858 = vmatpush1.bf16.msra.mxu0 %v5357_v45  ;;  %3899 = vmatpush1.bf16.msra.mxu1 %v5360_v46 }
 0x286   :  { %3859 = vmatprep.subr.bf16.mxu0 %v5365_v47  ;;  %3900 = vmatprep.subr.bf16.mxu1 %v5368_v48 }
 0x289   :  { %3860 = vmatpush1.bf16.msra.mxu0 %v5363_v49  ;;  %3901 = vmatpush1.bf16.msra.mxu1 %v5366_v50 }
 0x28a   :  { %3861 = vmatprep.subr.bf16.mxu0 %v5371_v51  ;;  %3902 = vmatprep.subr.bf16.mxu1 %v5374_v52 }
 0x28d   :  { %3862 = vmatpush1.bf16.msra.mxu0 %v5369_v54  ;;  %3903 = vmatpush1.bf16.msra.mxu1 %v5372_v55 }
 0x28e   :  { %3863 = vmatprep.subr.bf16.mxu0 %v5377_v56  ;;  %3904 = vmatprep.subr.bf16.mxu1 %v5380_v57 }
 0x291   :  { %3864 = vmatpush1.bf16.msra.mxu0 %v5375_v58  ;;  %3905 = vmatpush1.bf16.msra.mxu1 %v5378_v59  ;;  %v5429_v58 = vld [vmem:[%s7498_s8 + $0x190] ss:$28 sps:$4 sm:$0xff]  }
 0x292   :  { %3865 = vmatprep.subr.bf16.mxu0 %v5383_v60  ;;  %3906 = vmatprep.subr.bf16.mxu1 %v5386_v61  ;;  %v5432_v59 = vld [vmem:[%s7498_s8 + $0x510] ss:$28 sps:$4 sm:$0xff]  }
 0x295   :  { %3866 = vmatpush2.bf16.msra.mxu0 %v5381_v62  ;;  %3907 = vmatpush2.bf16.msra.mxu1 %v5384_v63  ;;  %v5437_v62 = vld [vmem:[%s7498_s8 + $0x15c] ss:$28 sps:$4 sm:$0xff]  }
 0x296   :  { %3867 = vmatprep.subr.bf16.mxu0 %v5389_v2  ;;  %3908 = vmatprep.subr.bf16.mxu1 %v5392_v3  ;;  %v5440_v63 = vld [vmem:[%s7498_s8 + $0x4dc] ss:$28 sps:$4 sm:$0xff]  }
 0x297   :  { %v5435_v2 = vld [vmem:[%s7498_s8 + $0x158] ss:$28 sps:$4 sm:$0xff]  }
 0x298   :  { %v5438_v3 = vld [vmem:[%s7498_s8 + $0x4d8] ss:$28 sps:$4 sm:$0xff]  }
 0x299   :  { %3868 = vmatpush2.bf16.msra.mxu0 %v5387_v4  ;;  %3909 = vmatpush2.bf16.msra.mxu1 %v5390_v5  ;;  %v5443_v4 = vld [vmem:[%s7498_s8 + $0x124] ss:$28 sps:$4 sm:$0xff]  }
 0x29a   :  { %3869 = vmatprep.subr.bf16.mxu0 %v5395_v6  ;;  %3910 = vmatprep.subr.bf16.mxu1 %v5398_v7  ;;  %v5446_v5 = vld [vmem:[%s7498_s8 + $0x4a4] ss:$28 sps:$4 sm:$0xff]  }
 0x29b   :  { %v5441_v6 = vld [vmem:[%s7498_s8 + $0x120] ss:$28 sps:$4 sm:$0xff]  }
 0x29c   :  { %v5444_v7 = vld [vmem:[%s7498_s8 + $0x4a0] ss:$28 sps:$4 sm:$0xff]  }
 0x29d   :  { %3870 = vmatpush2.bf16.msra.mxu0 %v5393_v9  ;;  %3911 = vmatpush2.bf16.msra.mxu1 %v5396_v11  ;;  %v5449_v9 = vld [vmem:[%s7498_s8 + $0xec] ss:$28 sps:$4 sm:$0xff]  }
 0x29e   :  { %3871 = vmatprep.subr.bf16.mxu0 %v5401_v12  ;;  %3912 = vmatprep.subr.bf16.mxu1 %v5404_v13  ;;  %v5452_v11 = vld [vmem:[%s7498_s8 + $0x46c] ss:$28 sps:$4 sm:$0xff]  }
 0x29f   :  { %v5447_v12 = vld [vmem:[%s7498_s8 + $0xe8] ss:$28 sps:$4 sm:$0xff]  }
 0x2a0   :  { %v5450_v13 = vld [vmem:[%s7498_s8 + $0x468] ss:$28 sps:$4 sm:$0xff]  }
 0x2a1   :  { %3872 = vmatpush2.bf16.msra.mxu0 %v5399_v14  ;;  %3913 = vmatpush2.bf16.msra.mxu1 %v5402_v15  ;;  %v5455_v14 = vld [vmem:[%s7498_s8 + $0xb4] ss:$28 sps:$4 sm:$0xff]  }
 0x2a2   :  { %3873 = vmatprep.subr.bf16.mxu0 %v5407_v16  ;;  %3914 = vmatprep.subr.bf16.mxu1 %v5410_v19  ;;  %v5458_v15 = vld [vmem:[%s7498_s8 + $0x434] ss:$28 sps:$4 sm:$0xff]  }
 0x2a3   :  { %v5453_v16 = vld [vmem:[%s7498_s8 + $0xb0] ss:$28 sps:$4 sm:$0xff]  }
 0x2a4   :  { %v5456_v19 = vld [vmem:[%s7498_s8 + $0x430] ss:$28 sps:$4 sm:$0xff]  }
 0x2a5   :  { %3874 = vmatpush2.bf16.msra.mxu0 %v5405_v21  ;;  %3915 = vmatpush2.bf16.msra.mxu1 %v5408_v22  ;;  %v5461_v21 = vld [vmem:[%s7498_s8 + $0x7c] ss:$28 sps:$4 sm:$0xff]  }
 0x2a6   :  { %3875 = vmatprep.subr.bf16.mxu0 %v5413_v23  ;;  %3916 = vmatprep.subr.bf16.mxu1 %v5416_v24  ;;  %v5464_v22 = vld [vmem:[%s7498_s8 + $0x3fc] ss:$28 sps:$4 sm:$0xff]  }
 0x2a7   :  { %v5459_v23 = vld [vmem:[%s7498_s8 + $0x78] ss:$28 sps:$4 sm:$0xff]  }
 0x2a8   :  { %v5462_v24 = vld [vmem:[%s7498_s8 + $0x3f8] ss:$28 sps:$4 sm:$0xff]  }
 0x2a9   :  { %3876 = vmatpush2.bf16.msra.mxu0 %v5411_v25  ;;  %3917 = vmatpush2.bf16.msra.mxu1 %v5414_v26  ;;  %v5467_v25 = vld [vmem:[%s7498_s8 + $0x44] ss:$28 sps:$4 sm:$0xff]  }
 0x2aa   :  { %3877 = vmatprep.subr.bf16.mxu0 %v5419_v27  ;;  %3918 = vmatprep.subr.bf16.mxu1 %v5422_v28  ;;  %v5470_v26 = vld [vmem:[%s7498_s8 + $0x3c4] ss:$28 sps:$4 sm:$0xff]  }
 0x2ab   :  { %v5465_v27 = vld [vmem:[%s7498_s8 + $0x40] ss:$28 sps:$4 sm:$0xff]  }
 0x2ac   :  { %v5468_v28 = vld [vmem:[%s7498_s8 + $0x3c0] ss:$28 sps:$4 sm:$0xff]  }
 0x2ad   :  { %3878 = vmatpush2.bf16.msra.mxu0 %v5417_v29  ;;  %3919 = vmatpush2.bf16.msra.mxu1 %v5420_v53  ;;  %v5473_v29 = vld [vmem:[%s7498_s8 + $0xc] ss:$28 sps:$4 sm:$0xff]  }
 0x2ae   :  { %3879 = vmatprep.subr.bf16.mxu0 %v5425_v10  ;;  %3920 = vmatprep.subr.bf16.mxu1 %v5428_v30  ;;  %v5476_v53 = vld [vmem:[%s7498_s8 + $0x38c] ss:$28 sps:$4 sm:$0xff]  }
 0x2af   :  { %v5471_v10 = vld [vmem:[%s7498_s8 + $0x8] ss:$28 sps:$4 sm:$0xff]  }
 0x2b0   :  { %v5474_v30 = vld [vmem:[%s7498_s8 + $0x388] ss:$28 sps:$4 sm:$0xff]  }
 0x2b1   :  { %3880 = vmatpush2.bf16.msra.mxu0 %v5423_v31  ;;  %3921 = vmatpush2.bf16.msra.mxu1 %v5426_v20  ;;  %v5479_v31 = vld [vmem:[%s7498_s8 + $0x354] ss:$28 sps:$4 sm:$0xff]  }
 0x2b2   :  { %3931 = vmatprep.subr.bf16.mxu0 %v5431_v18  ;;  %3972 = vmatprep.subr.bf16.mxu1 %v5434_v32  ;;  %v5482_v20 = vld [vmem:[%s7498_s8 + $0x6d4] ss:$28 sps:$4 sm:$0xff]  }
 0x2b3   :  { %v5477_v18 = vld [vmem:[%s7498_s8 + $0x350] ss:$28 sps:$4 sm:$0xff]  }
 0x2b4   :  { %v5480_v32 = vld [vmem:[%s7498_s8 + $0x6d0] ss:$28 sps:$4 sm:$0xff]  }
 0x334   :  { %v2348_v8 = vpop.f32.mrf.mxu0  ;;  %v2389_v39 = vpop.f32.mrf.mxu1 }
 0x335   :  { %v2349_v41 = vadd.f32 %v2348_v8, %v2137_v34  ;;  %v2390_v42 = vadd.f32 %v2389_v39, %v2145_v35  ;;  %v5488_v34 = vld [vmem:[%s7498_s8 + $0x69c] ss:$28 sps:$4 sm:$0xff]   ;;  %v5494_v8 = vld [vmem:[%s7498_s8 + $0x664] ss:$28 sps:$4 sm:$0xff]  }
 0x336   :  { %v2350_v43 = vpop.f32.mrf.mxu0  ;;  %v2391_v44 = vpop.f32.mrf.mxu1  ;;  %v5483_v35 = vld [vmem:[%s7498_s8 + $0x318] ss:$28 sps:$4 sm:$0xff]   ;;  %v5489_v39 = vld [vmem:[%s7498_s8 + $0x2e0] ss:$28 sps:$4 sm:$0xff]  }
 0x337   :  { %v2351_v45 = vadd.f32 %v2350_v43, %v2141_v36  ;;  %v2392_v46 = vadd.f32 %v2391_v44, %v2149_v17  ;;  %v2396_v47 = vmax.f32 %v2349_v41, 0.0  ;;  %v2398_v48 = vmax.f32 %v2390_v42, 0.0  ;;  %v5486_v36 = vld [vmem:[%s7498_s8 + $0x698] ss:$28 sps:$4 sm:$0xff]   ;;  %v5491_v17 = vld [vmem:[%s7498_s8 + $0x2e4] ss:$28 sps:$4 sm:$0xff]  }
 0x338   :  { %v2352_v49 = vpop.f32.mrf.mxu0  ;;  %v2393_v50 = vpop.f32.mrf.mxu1  ;;  %v5492_v41 = vld [vmem:[%s7498_s8 + $0x660] ss:$28 sps:$4 sm:$0xff]   ;;  %v5497_v42 = vld [vmem:[%s7498_s8 + $0x2ac] ss:$28 sps:$4 sm:$0xff]  }
 0x339   :  { %v2397_v51 = vmax.f32 %v2351_v45, 0.0  ;;  %v2399_v52 = vmax.f32 %v2392_v46, 0.0  ;;  %v6970_v60 = vpack.c.bf16 %v2396_v47, %v2396_v47  ;;  %v6972_v61 = vpack.c.bf16 %v2398_v48, %v2398_v48  ;;  %v5500_v43 = vld [vmem:[%s7498_s8 + $0x62c] ss:$28 sps:$4 sm:$0xff]   ;;  %v5503_v46 = vld [vmem:[%s7498_s8 + $0x274] ss:$28 sps:$4 sm:$0xff]  }
 0x33a   :  { %v2353_v54 = vpop.f32.mrf.mxu0  ;;  %v2394_v55 = vpop.f32.mrf.mxu1  ;;  %v5495_v44 = vld [vmem:[%s7498_s8 + $0x2a8] ss:$28 sps:$4 sm:$0xff]   ;;  %v5506_v47 = vld [vmem:[%s7498_s8 + $0x5f4] ss:$28 sps:$4 sm:$0xff]   ;;  %v5509_v50 = vld [vmem:[%s7498_s8 + $0x23c] ss:$28 sps:$4 sm:$0xff]  }
 0x33b   :  { %v6960_v56 = vpack.c.bf16 %v2397_v51, %v2397_v51  ;;  %v6962_v57 = vpack.c.bf16 %v2399_v52, %v2399_v52  ;;  %v5498_v45 = vld [vmem:[%s7498_s8 + $0x628] ss:$28 sps:$4 sm:$0xff]   ;;  %v5501_v48 = vld [vmem:[%s7498_s8 + $0x270] ss:$28 sps:$4 sm:$0xff]   ;;  %v5512_v51 = vld [vmem:[%s7498_s8 + $0x5bc] ss:$28 sps:$4 sm:$0xff]  }
 0x33c   :  { %v5504_v49 = vld [vmem:[%s7498_s8 + $0x5f0] ss:$28 sps:$4 sm:$0xff]   ;;  %v5507_v52 = vld [vmem:[%s7498_s8 + $0x238] ss:$28 sps:$4 sm:$0xff]   ;;  %v5515_v55 = vld [vmem:[%s7498_s8 + $0x204] ss:$28 sps:$4 sm:$0xff]  }
 0x33d   :  { %3881 = vmatprep.mubr.bf16.mxu0 %v6960_v56  ;;  %3922 = vmatprep.mubr.bf16.mxu1 %v6962_v57  ;;  %v5510_v54 = vld [vmem:[%s7498_s8 + $0x5b8] ss:$28 sps:$4 sm:$0xff]  }
 0x33e   :  { %3882 = vmatmul.mubr.bf16.vlgmr.msra.gmra.mxu0 %v6970_v60  ;;  %3923 = vmatmul.mubr.bf16.vlgmr.msra.gmra.mxu1 %v6972_v61 }
 0x33f   :  { %3932 = vmatpush1.bf16.msra.mxu0 %v5429_v58  ;;  %3973 = vmatpush1.bf16.msra.mxu1 %v5432_v59  ;;  %v5518_v58 = vld [vmem:[%s7498_s8 + $0x584] ss:$28 sps:$4 sm:$0xff]  }
 0x340   :  { %3963 = vmatprep.mubr.bf16.mxu0 %v6960_v56  ;;  %4004 = vmatprep.mubr.bf16.mxu1 %v6962_v57  ;;  %v5513_v59 = vld [vmem:[%s7498_s8 + $0x200] ss:$28 sps:$4 sm:$0xff]  }
 0x341   :  { %3933 = vmatprep.subr.bf16.mxu0 %v5437_v62  ;;  %3974 = vmatprep.subr.bf16.mxu1 %v5440_v63  ;;  %v5516_v62 = vld [vmem:[%s7498_s8 + $0x580] ss:$28 sps:$4 sm:$0xff]   ;;  %v5521_v63 = vld [vmem:[%s7498_s8 + $0x1cc] ss:$28 sps:$4 sm:$0xff]  }
 0x343   :  { %3934 = vmatpush1.bf16.msra.mxu0 %v5435_v2  ;;  %3975 = vmatpush1.bf16.msra.mxu1 %v5438_v3  ;;  %v5524_v2 = vld [vmem:[%s7498_s8 + $0x54c] ss:$28 sps:$4 sm:$0xff]  }
 0x344   :  { %3935 = vmatprep.subr.bf16.mxu0 %v5443_v4  ;;  %3976 = vmatprep.subr.bf16.mxu1 %v5446_v5  ;;  %v5519_v3 = vld [vmem:[%s7498_s8 + $0x1c8] ss:$28 sps:$4 sm:$0xff]   ;;  %v5527_v5 = vld [vmem:[%s7498_s8 + $0x19c] ss:$28 sps:$4 sm:$0xff]  }
 0x345   :  { %v5522_v4 = vld [vmem:[%s7498_s8 + $0x548] ss:$28 sps:$4 sm:$0xff]  }
 0x347   :  { %3936 = vmatpush1.bf16.msra.mxu0 %v5441_v6  ;;  %3977 = vmatpush1.bf16.msra.mxu1 %v5444_v7  ;;  %v5530_v6 = vld [vmem:[%s7498_s8 + $0x51c] ss:$28 sps:$4 sm:$0xff]  }
 0x348   :  { %3937 = vmatprep.subr.bf16.mxu0 %v5449_v9  ;;  %3978 = vmatprep.subr.bf16.mxu1 %v5452_v11  ;;  %v5525_v7 = vld [vmem:[%s7498_s8 + $0x198] ss:$28 sps:$4 sm:$0xff]   ;;  %v5533_v11 = vld [vmem:[%s7498_s8 + $0x164] ss:$28 sps:$4 sm:$0xff]  }
 0x349   :  { %v5528_v9 = vld [vmem:[%s7498_s8 + $0x518] ss:$28 sps:$4 sm:$0xff]  }
 0x34b   :  { %3938 = vmatpush1.bf16.msra.mxu0 %v5447_v12  ;;  %3979 = vmatpush1.bf16.msra.mxu1 %v5450_v13  ;;  %v5536_v12 = vld [vmem:[%s7498_s8 + $0x4e4] ss:$28 sps:$4 sm:$0xff]  }
 0x34c   :  { %3939 = vmatprep.subr.bf16.mxu0 %v5455_v14  ;;  %3980 = vmatprep.subr.bf16.mxu1 %v5458_v15  ;;  %v5531_v13 = vld [vmem:[%s7498_s8 + $0x160] ss:$28 sps:$4 sm:$0xff]   ;;  %v5539_v15 = vld [vmem:[%s7498_s8 + $0x12c] ss:$28 sps:$4 sm:$0xff]  }
 0x34d   :  { %v5534_v14 = vld [vmem:[%s7498_s8 + $0x4e0] ss:$28 sps:$4 sm:$0xff]  }
 0x34f   :  { %3940 = vmatpush1.bf16.msra.mxu0 %v5453_v16  ;;  %3981 = vmatpush1.bf16.msra.mxu1 %v5456_v19  ;;  %v5542_v16 = vld [vmem:[%s7498_s8 + $0x4ac] ss:$28 sps:$4 sm:$0xff]  }
 0x350   :  { %3941 = vmatprep.subr.bf16.mxu0 %v5461_v21  ;;  %3982 = vmatprep.subr.bf16.mxu1 %v5464_v22  ;;  %v5537_v19 = vld [vmem:[%s7498_s8 + $0x128] ss:$28 sps:$4 sm:$0xff]   ;;  %v5545_v22 = vld [vmem:[%s7498_s8 + $0xf4] ss:$28 sps:$4 sm:$0xff]  }
 0x351   :  { %v5540_v21 = vld [vmem:[%s7498_s8 + $0x4a8] ss:$28 sps:$4 sm:$0xff]  }
 0x353   :  { %3942 = vmatpush1.bf16.msra.mxu0 %v5459_v23  ;;  %3983 = vmatpush1.bf16.msra.mxu1 %v5462_v24  ;;  %v5548_v23 = vld [vmem:[%s7498_s8 + $0x474] ss:$28 sps:$4 sm:$0xff]  }
 0x354   :  { %3943 = vmatprep.subr.bf16.mxu0 %v5467_v25  ;;  %3984 = vmatprep.subr.bf16.mxu1 %v5470_v26  ;;  %v5543_v24 = vld [vmem:[%s7498_s8 + $0xf0] ss:$28 sps:$4 sm:$0xff]   ;;  %v5551_v26 = vld [vmem:[%s7498_s8 + $0xbc] ss:$28 sps:$4 sm:$0xff]  }
 0x355   :  { %v5546_v25 = vld [vmem:[%s7498_s8 + $0x470] ss:$28 sps:$4 sm:$0xff]  }
 0x357   :  { %3944 = vmatpush1.bf16.msra.mxu0 %v5465_v27  ;;  %3985 = vmatpush1.bf16.msra.mxu1 %v5468_v28  ;;  %v5554_v27 = vld [vmem:[%s7498_s8 + $0x43c] ss:$28 sps:$4 sm:$0xff]  }
 0x358   :  { %3945 = vmatprep.subr.bf16.mxu0 %v5473_v29  ;;  %3986 = vmatprep.subr.bf16.mxu1 %v5476_v53  ;;  %v5549_v28 = vld [vmem:[%s7498_s8 + $0xb8] ss:$28 sps:$4 sm:$0xff]   ;;  %v5557_v53 = vld [vmem:[%s7498_s8 + $0x84] ss:$28 sps:$4 sm:$0xff]  }
 0x359   :  { %v5552_v29 = vld [vmem:[%s7498_s8 + $0x438] ss:$28 sps:$4 sm:$0xff]  }
 0x35b   :  { %3946 = vmatpush1.bf16.msra.mxu0 %v5471_v10  ;;  %3987 = vmatpush1.bf16.msra.mxu1 %v5474_v30  ;;  %v5560_v10 = vld [vmem:[%s7498_s8 + $0x404] ss:$28 sps:$4 sm:$0xff]  }
 0x35c   :  { %3947 = vmatprep.subr.bf16.mxu0 %v5479_v31  ;;  %3988 = vmatprep.subr.bf16.mxu1 %v5482_v20  ;;  %v5555_v30 = vld [vmem:[%s7498_s8 + $0x80] ss:$28 sps:$4 sm:$0xff]   ;;  %v5563_v20 = vld [vmem:[%s7498_s8 + $0x4c] ss:$28 sps:$4 sm:$0xff]  }
 0x35d   :  { %v5558_v31 = vld [vmem:[%s7498_s8 + $0x400] ss:$28 sps:$4 sm:$0xff]  }
 0x35f   :  { %3948 = vmatpush2.bf16.msra.mxu0 %v5477_v18  ;;  %3989 = vmatpush2.bf16.msra.mxu1 %v5480_v32  ;;  %v5566_v18 = vld [vmem:[%s7498_s8 + $0x3cc] ss:$28 sps:$4 sm:$0xff]  }
 0x360   :  { %3949 = vmatprep.subr.bf16.mxu0 %v5485_v33  ;;  %3990 = vmatprep.subr.bf16.mxu1 %v5488_v34  ;;  %v5561_v32 = vld [vmem:[%s7498_s8 + $0x48] ss:$28 sps:$4 sm:$0xff]   ;;  %v5569_v34 = vld [vmem:[%s7498_s8 + $0x14] ss:$28 sps:$4 sm:$0xff]  }
 0x361   :  { %v5564_v33 = vld [vmem:[%s7498_s8 + $0x3c8] ss:$28 sps:$4 sm:$0xff]  }
 0x363   :  { %3950 = vmatpush2.bf16.msra.mxu0 %v5483_v35  ;;  %3991 = vmatpush2.bf16.msra.mxu1 %v5486_v36  ;;  %v5572_v35 = vld [vmem:[%s7498_s8 + $0x394] ss:$28 sps:$4 sm:$0xff]  }
 0x364   :  { %3951 = vmatprep.subr.bf16.mxu0 %v5491_v17  ;;  %3992 = vmatprep.subr.bf16.mxu1 %v5494_v8  ;;  %v5567_v36 = vld [vmem:[%s7498_s8 + $0x10] ss:$28 sps:$4 sm:$0xff]   ;;  %v5575_v8 = vld [vmem:[%s7498_s8 + $0x35c] ss:$28 sps:$4 sm:$0xff]  }
 0x365   :  { %v5570_v17 = vld [vmem:[%s7498_s8 + $0x390] ss:$28 sps:$4 sm:$0xff]  }
 0x367   :  { %3952 = vmatpush2.bf16.msra.mxu0 %v5489_v39  ;;  %3993 = vmatpush2.bf16.msra.mxu1 %v5492_v41  ;;  %v5578_v39 = vld [vmem:[%s7498_s8 + $0x6dc] ss:$28 sps:$4 sm:$0xff]  }
 0x368   :  { %3953 = vmatprep.subr.bf16.mxu0 %v5497_v42  ;;  %3994 = vmatprep.subr.bf16.mxu1 %v5500_v43  ;;  %v5573_v41 = vld [vmem:[%s7498_s8 + $0x358] ss:$28 sps:$4 sm:$0xff]   ;;  %v5581_v43 = vld [vmem:[%s7498_s8 + $0x324] ss:$28 sps:$4 sm:$0xff]  }
 0x369   :  { %v5576_v42 = vld [vmem:[%s7498_s8 + $0x6d8] ss:$28 sps:$4 sm:$0xff]  }
 0x36b   :  { %3954 = vmatpush2.bf16.msra.mxu0 %v5495_v44  ;;  %3995 = vmatpush2.bf16.msra.mxu1 %v5498_v45  ;;  %v5584_v44 = vld [vmem:[%s7498_s8 + $0x6a4] ss:$28 sps:$4 sm:$0xff]  }
 0x36c   :  { %3955 = vmatprep.subr.bf16.mxu0 %v5503_v46  ;;  %3996 = vmatprep.subr.bf16.mxu1 %v5506_v47  ;;  %v5579_v45 = vld [vmem:[%s7498_s8 + $0x320] ss:$28 sps:$4 sm:$0xff]   ;;  %v5587_v47 = vld [vmem:[%s7498_s8 + $0x2ec] ss:$28 sps:$4 sm:$0xff]  }
 0x36d   :  { %v5582_v46 = vld [vmem:[%s7498_s8 + $0x6a0] ss:$28 sps:$4 sm:$0xff]  }
 0x36f   :  { %3956 = vmatpush2.bf16.msra.mxu0 %v5501_v48  ;;  %3997 = vmatpush2.bf16.msra.mxu1 %v5504_v49  ;;  %v5590_v48 = vld [vmem:[%s7498_s8 + $0x66c] ss:$28 sps:$4 sm:$0xff]  }
 0x370   :  { %3957 = vmatprep.subr.bf16.mxu0 %v5509_v50  ;;  %3998 = vmatprep.subr.bf16.mxu1 %v5512_v51  ;;  %v5585_v49 = vld [vmem:[%s7498_s8 + $0x2e8] ss:$28 sps:$4 sm:$0xff]   ;;  %v5593_v51 = vld [vmem:[%s7498_s8 + $0x2b4] ss:$28 sps:$4 sm:$0xff]  }
 0x371   :  { %v5588_v50 = vld [vmem:[%s7498_s8 + $0x668] ss:$28 sps:$4 sm:$0xff]  }
 0x373   :  { %3958 = vmatpush2.bf16.msra.mxu0 %v5507_v52  ;;  %3999 = vmatpush2.bf16.msra.mxu1 %v5510_v54  ;;  %v5596_v52 = vld [vmem:[%s7498_s8 + $0x634] ss:$28 sps:$4 sm:$0xff]  }
 0x374   :  { %3959 = vmatprep.subr.bf16.mxu0 %v5515_v55  ;;  %4000 = vmatprep.subr.bf16.mxu1 %v5518_v58  ;;  %v5591_v54 = vld [vmem:[%s7498_s8 + $0x2b0] ss:$28 sps:$4 sm:$0xff]   ;;  %v5599_v58 = vld [vmem:[%s7498_s8 + $0x27c] ss:$28 sps:$4 sm:$0xff]  }
 0x375   :  { %v5594_v55 = vld [vmem:[%s7498_s8 + $0x630] ss:$28 sps:$4 sm:$0xff]  }
 0x377   :  { %3960 = vmatpush2.bf16.msra.mxu0 %v5513_v59  ;;  %4001 = vmatpush2.bf16.msra.mxu1 %v5516_v62  ;;  %v5602_v59 = vld [vmem:[%s7498_s8 + $0x5fc] ss:$28 sps:$4 sm:$0xff]  }
 0x378   :  { %3961 = vmatprep.subr.bf16.mxu0 %v5521_v63  ;;  %4002 = vmatprep.subr.bf16.mxu1 %v5524_v2  ;;  %v5597_v62 = vld [vmem:[%s7498_s8 + $0x278] ss:$28 sps:$4 sm:$0xff]   ;;  %v5605_v2 = vld [vmem:[%s7498_s8 + $0x244] ss:$28 sps:$4 sm:$0xff]  }
 0x379   :  { %v5600_v63 = vld [vmem:[%s7498_s8 + $0x5f8] ss:$28 sps:$4 sm:$0xff]  }
 0x37b   :  { %3962 = vmatpush2.bf16.msra.mxu0 %v5519_v3  ;;  %4003 = vmatpush2.bf16.msra.mxu1 %v5522_v4  ;;  %v5608_v3 = vld [vmem:[%s7498_s8 + $0x5c4] ss:$28 sps:$4 sm:$0xff]  }
 0x37c   :  { %4013 = vmatprep.subr.bf16.mxu0 %v5527_v5  ;;  %4054 = vmatprep.subr.bf16.mxu1 %v5530_v6  ;;  %v5603_v4 = vld [vmem:[%s7498_s8 + $0x240] ss:$28 sps:$4 sm:$0xff]   ;;  %v5611_v6 = vld [vmem:[%s7498_s8 + $0x20c] ss:$28 sps:$4 sm:$0xff]  }
 0x37d   :  { %v5606_v5 = vld [vmem:[%s7498_s8 + $0x5c0] ss:$28 sps:$4 sm:$0xff]  }
 0x37e   :  { %3964 = vmatmul.mubr.bf16.vlgmr.msra.gmra.mxu0 %v6970_v60  ;;  %4005 = vmatmul.mubr.bf16.vlgmr.msra.gmra.mxu1 %v6972_v61 }
 0x37f   :  { %4014 = vmatpush1.bf16.msra.mxu0 %v5525_v7  ;;  %4045 = vmatprep.mubr.bf16.mxu0 %v6960_v56  ;;  %v5614_v7 = vld [vmem:[%s7498_s8 + $0x58c] ss:$28 sps:$4 sm:$0xff]  }
 0x380   :  { %4055 = vmatpush1.bf16.msra.mxu1 %v5528_v9  ;;  %4086 = vmatprep.mubr.bf16.mxu1 %v6962_v57  ;;  %v5609_v9 = vld [vmem:[%s7498_s8 + $0x208] ss:$28 sps:$4 sm:$0xff]  }
 0x381   :  { %4015 = vmatprep.subr.bf16.mxu0 %v5533_v11  ;;  %4056 = vmatprep.subr.bf16.mxu1 %v5536_v12  ;;  %v5612_v11 = vld [vmem:[%s7498_s8 + $0x588] ss:$28 sps:$4 sm:$0xff]   ;;  %v5617_v12 = vld [vmem:[%s7498_s8 + $0x1d4] ss:$28 sps:$4 sm:$0xff]  }
 0x383   :  { %4016 = vmatpush1.bf16.msra.mxu0 %v5531_v13  ;;  %v5620_v13 = vld [vmem:[%s7498_s8 + $0x554] ss:$28 sps:$4 sm:$0xff]  }
 0x384   :  { %4057 = vmatpush1.bf16.msra.mxu1 %v5534_v14  ;;  %4017 = vmatprep.subr.bf16.mxu0 %v5539_v15  ;;  %v5615_v14 = vld [vmem:[%s7498_s8 + $0x1d0] ss:$28 sps:$4 sm:$0xff]  }
 0x385   :  { %4058 = vmatprep.subr.bf16.mxu1 %v5542_v16  ;;  %v5618_v15 = vld [vmem:[%s7498_s8 + $0x550] ss:$28 sps:$4 sm:$0xff]   ;;  %v5621_v16 = vld [vmem:[%s7498_s8 + $0x360] ss:$28 sps:$4 sm:$0xff]  }
 0x387   :  { %4018 = vmatpush1.bf16.msra.mxu0 %v5537_v19  ;;  %v5622_v19 = vld [vmem:[%s7498_s8 + $0x6e0] ss:$28 sps:$4 sm:$0xff]  }
 0x388   :  { %4059 = vmatpush1.bf16.msra.mxu1 %v5540_v21  ;;  %4019 = vmatprep.subr.bf16.mxu0 %v5545_v22  ;;  %v5623_v21 = vld [vmem:[%s7498_s8 + $0x1a0] ss:$28 sps:$4 sm:$0xff]  }
 0x389   :  { %4060 = vmatprep.subr.bf16.mxu1 %v5548_v23  ;;  %v5624_v22 = vld [vmem:[%s7498_s8 + $0x520] ss:$28 sps:$4 sm:$0xff]   ;;  %v5625_v23 = vld [vmem:[%s7498_s8 + $0x328] ss:$28 sps:$4 sm:$0xff]  }
 0x38b   :  { %4020 = vmatpush1.bf16.msra.mxu0 %v5543_v24  ;;  %v5626_v24 = vld [vmem:[%s7498_s8 + $0x6a8] ss:$28 sps:$4 sm:$0xff]  }
 0x38c   :  { %4061 = vmatpush1.bf16.msra.mxu1 %v5546_v25  ;;  %4021 = vmatprep.subr.bf16.mxu0 %v5551_v26  ;;  %v5627_v25 = vld [vmem:[%s7498_s8 + $0x168] ss:$28 sps:$4 sm:$0xff]  }
 0x38d   :  { %4062 = vmatprep.subr.bf16.mxu1 %v5554_v27  ;;  %v5628_v26 = vld [vmem:[%s7498_s8 + $0x4e8] ss:$28 sps:$4 sm:$0xff]   ;;  %v5629_v27 = vld [vmem:[%s7498_s8 + $0x2f0] ss:$28 sps:$4 sm:$0xff]  }
 0x38f   :  { %4022 = vmatpush1.bf16.msra.mxu0 %v5549_v28  ;;  %v5630_v28 = vld [vmem:[%s7498_s8 + $0x670] ss:$28 sps:$4 sm:$0xff]  }
 0x390   :  { %4063 = vmatpush1.bf16.msra.mxu1 %v5552_v29  ;;  %4023 = vmatprep.subr.bf16.mxu0 %v5557_v53  ;;  %v5632_v29 = vld [vmem:[%s7498_s8 + $0x4b0] ss:$28 sps:$4 sm:$0xff]   ;;  %v5634_v53 = vld [vmem:[%s7498_s8 + $0x638] ss:$28 sps:$4 sm:$0xff]  }
 0x391   :  { %4064 = vmatprep.subr.bf16.mxu1 %v5560_v10  ;;  %v5635_v10 = vld [vmem:[%s7498_s8 + $0xf8] ss:$28 sps:$4 sm:$0xff]  }
 0x393   :  { %4024 = vmatpush1.bf16.msra.mxu0 %v5555_v30  ;;  %v5636_v30 = vld [vmem:[%s7498_s8 + $0x478] ss:$28 sps:$4 sm:$0xff]  }
 0x394   :  { %4065 = vmatpush1.bf16.msra.mxu1 %v5558_v31  ;;  %4025 = vmatprep.subr.bf16.mxu0 %v5563_v20  ;;  %v5637_v31 = vld [vmem:[%s7498_s8 + $0x280] ss:$28 sps:$4 sm:$0xff]  }
 0x395   :  { %4066 = vmatprep.subr.bf16.mxu1 %v5566_v18  ;;  %v5638_v20 = vld [vmem:[%s7498_s8 + $0x600] ss:$28 sps:$4 sm:$0xff]  }
 0x396   :  { %v5639_v18 = vld [vmem:[%s7498_s8 + $0xc0] ss:$28 sps:$4 sm:$0xff]  }
 0x397   :  { %4026 = vmatpush1.bf16.msra.mxu0 %v5561_v32  ;;  %v5640_v32 = vld [vmem:[%s7498_s8 + $0x440] ss:$28 sps:$4 sm:$0xff]  }
 0x398   :  { %4067 = vmatpush1.bf16.msra.mxu1 %v5564_v33  ;;  %4027 = vmatprep.subr.bf16.mxu0 %v5569_v34  ;;  %v5641_v33 = vld [vmem:[%s7498_s8 + $0x248] ss:$28 sps:$4 sm:$0xff]  }
 0x399   :  { %4068 = vmatprep.subr.bf16.mxu1 %v5572_v35  ;;  %v5642_v34 = vld [vmem:[%s7498_s8 + $0x5c8] ss:$28 sps:$4 sm:$0xff]  }
 0x39a   :  { %v5643_v35 = vld [vmem:[%s7498_s8 + $0x88] ss:$28 sps:$4 sm:$0xff]  }
 0x39b   :  { %4028 = vmatpush1.bf16.msra.mxu0 %v5567_v36  ;;  %v5644_v36 = vld [vmem:[%s7498_s8 + $0x408] ss:$28 sps:$4 sm:$0xff]  }
 0x39c   :  { %4069 = vmatpush1.bf16.msra.mxu1 %v5570_v17  ;;  %4029 = vmatprep.subr.bf16.mxu0 %v5575_v8  ;;  %v5645_v17 = vld [vmem:[%s7498_s8 + $0x210] ss:$28 sps:$4 sm:$0xff]  }
 0x39d   :  { %4070 = vmatprep.subr.bf16.mxu1 %v5578_v39  ;;  %v5646_v8 = vld [vmem:[%s7498_s8 + $0x590] ss:$28 sps:$4 sm:$0xff]  }
 0x39e   :  { %v5647_v39 = vld [vmem:[%s7498_s8 + $0x50] ss:$28 sps:$4 sm:$0xff]  }
 0x39f   :  { %4030 = vmatpush2.bf16.msra.mxu0 %v5573_v41  ;;  %v5648_v41 = vld [vmem:[%s7498_s8 + $0x3d0] ss:$28 sps:$4 sm:$0xff]  }
 0x3a0   :  { %4071 = vmatpush2.bf16.msra.mxu1 %v5576_v42  ;;  %4031 = vmatprep.subr.bf16.mxu0 %v5581_v43  ;;  %v5649_v42 = vld [vmem:[%s7498_s8 + $0x1d8] ss:$28 sps:$4 sm:$0xff]  }
 0x3a1   :  { %4072 = vmatprep.subr.bf16.mxu1 %v5584_v44  ;;  %v5650_v43 = vld [vmem:[%s7498_s8 + $0x558] ss:$28 sps:$4 sm:$0xff]  }
 0x3a2   :  { %v5651_v44 = vld [vmem:[%s7498_s8 + $0x18] ss:$28 sps:$4 sm:$0xff]  }
 0x3a3   :  { %4032 = vmatpush2.bf16.msra.mxu0 %v5579_v45  ;;  %v5652_v45 = vld [vmem:[%s7498_s8 + $0x398] ss:$28 sps:$4 sm:$0xff]  }
 0x3a4   :  { %4073 = vmatpush2.bf16.msra.mxu1 %v5582_v46  ;;  %4033 = vmatprep.subr.bf16.mxu0 %v5587_v47  ;;  %v7461_v46 = vld [vmem:[%s7499_s9] sm:$0x7f] }
 0x3a5   :  { %4074 = vmatprep.subr.bf16.mxu1 %v5590_v48  ;;  %v2665_v47 = vrot.slane %v7461_v46, %v6631_v38  ;;  %v2669_v48 = vrot.slane %v7461_v46, %v6637_v40 }
 0x3a7   :  { %4034 = vmatpush2.bf16.msra.mxu0 %v5585_v49 }
 0x3a8   :  { %4075 = vmatpush2.bf16.msra.mxu1 %v5588_v50  ;;  %4035 = vmatprep.subr.bf16.mxu0 %v5593_v51 }
 0x3a9   :  { %4076 = vmatprep.subr.bf16.mxu1 %v5596_v52 }
 0x3ab   :  { %4036 = vmatpush2.bf16.msra.mxu0 %v5591_v54 }
 0x3ac   :  { %4077 = vmatpush2.bf16.msra.mxu1 %v5594_v55  ;;  %4037 = vmatprep.subr.bf16.mxu0 %v5599_v58 }
 0x3ad   :  { %4078 = vmatprep.subr.bf16.mxu1 %v5602_v59 }
 0x3af   :  { %4038 = vmatpush2.bf16.msra.mxu0 %v5597_v62 }
 0x3b0   :  { %4079 = vmatpush2.bf16.msra.mxu1 %v5600_v63  ;;  %4039 = vmatprep.subr.bf16.mxu0 %v5605_v2 }
 0x3b1   :  { %4080 = vmatprep.subr.bf16.mxu1 %v5608_v3 }
 0x3b3   :  { %4040 = vmatpush2.bf16.msra.mxu0 %v5603_v4 }
 0x3b4   :  { %4081 = vmatpush2.bf16.msra.mxu1 %v5606_v5  ;;  %4041 = vmatprep.subr.bf16.mxu0 %v5611_v6 }
 0x3b5   :  { %4082 = vmatprep.subr.bf16.mxu1 %v5614_v7 }
 0x3b7   :  { %4042 = vmatpush2.bf16.msra.mxu0 %v5609_v9 }
 0x3b8   :  { %4083 = vmatpush2.bf16.msra.mxu1 %v5612_v11  ;;  %4043 = vmatprep.subr.bf16.mxu0 %v5617_v12 }
 0x3b9   :  { %4084 = vmatprep.subr.bf16.mxu1 %v5620_v13  ;;  %v2673_v13 = vrot.slane %v7461_v46, %v6643_v0 }
 0x3bb   :  { %4044 = vmatpush2.bf16.msra.mxu0 %v5615_v14  ;;  %v2677_v14 = vrot.slane %v7461_v46, %v6646_v1 }
 0x3bc   :  { %4085 = vmatpush2.bf16.msra.mxu1 %v5618_v15  ;;  %4833 = vmatprep.subr.bf16.mxu0 %v5621_v16 }
 0x3bd   :  { %4855 = vmatprep.subr.bf16.mxu1 %v5622_v19 }
 0x3be   :  { %4046 = vmatmul.mubr.bf16.vlgmr.msra.gmra.mxu0 %v6970_v60 }
 0x3bf   :  { %4087 = vmatmul.mubr.bf16.vlgmr.msra.gmra.mxu1 %v6972_v61  ;;  %4834 = vmatpush3.bf16.msra.mxu0 %v5623_v21 }
 0x3c0   :  { %4127 = vmatprep.mubr.bf16.mxu0 %v6960_v56  ;;  %4856 = vmatpush3.bf16.msra.mxu1 %v5624_v22  ;;  %v5631_v56 = vld [vmem:[%s7498_s8 + $0x130] ss:$28 sps:$4 sm:$0xff]  }
 0x3c1   :  { %4167 = vmatprep.mubr.bf16.mxu1 %v6962_v57  ;;  %4835 = vmatprep.subr.bf16.mxu0 %v5625_v23  ;;  %v5633_v57 = vld [vmem:[%s7498_s8 + $0x2b8] ss:$28 sps:$4 sm:$0xff]  }
 0x3c2   :  { %4857 = vmatprep.subr.bf16.mxu1 %v5626_v24 }
 0x3c3   :  { %4836 = vmatpush3.bf16.msra.mxu0 %v5627_v25 }
 0x3c4   :  { %4858 = vmatpush3.bf16.msra.mxu1 %v5628_v26  ;;  %4837 = vmatprep.subr.bf16.mxu0 %v5629_v27 }
 0x3c5   :  { %4859 = vmatprep.subr.bf16.mxu1 %v5630_v28 }
 0x3c7   :  { %4838 = vmatpush3.bf16.msra.mxu0 %v5631_v56 }
 0x3c8   :  { %4860 = vmatpush3.bf16.msra.mxu1 %v5632_v29  ;;  %4839 = vmatprep.subr.bf16.mxu0 %v5633_v57 }
 0x3c9   :  { %4861 = vmatprep.subr.bf16.mxu1 %v5634_v53 }
 0x3cb   :  { %4840 = vmatpush3.bf16.msra.mxu0 %v5635_v10 }
 0x3cc   :  { %4862 = vmatpush3.bf16.msra.mxu1 %v5636_v30  ;;  %4841 = vmatprep.subr.bf16.mxu0 %v5637_v31 }
 0x3cd   :  { %4863 = vmatprep.subr.bf16.mxu1 %v5638_v20  ;;  %v5728_v20 = vmov 1983009808  }
 0x3cf   :  { %4842 = vmatpush3.bf16.msra.mxu0 %v5639_v18  ;;  %v4227_v18 = vunpack.c.l.s4 %v5728_v20 }
 0x3d0   :  { %4864 = vmatpush3.bf16.msra.mxu1 %v5640_v32  ;;  %4843 = vmatprep.subr.bf16.mxu0 %v5641_v33 }
 0x3d1   :  { %4865 = vmatprep.subr.bf16.mxu1 %v5642_v34  ;;  %v4228_v32 = vunpack.c.0.s8 %v4227_v18 }
 0x3d3   :  { %4844 = vmatpush3.bf16.msra.mxu0 %v5643_v35  ;;  %v7472_v34 = vsub.s32 %v4228_v32, %v6628_v37 }
 0x3d4   :  { %4866 = vmatpush3.bf16.msra.mxu1 %v5644_v36  ;;  %4845 = vmatprep.subr.bf16.mxu0 %v5645_v17 }
 0x3d5   :  { %4867 = vmatprep.subr.bf16.mxu1 %v5646_v8 }
 0x3d7   :  { %4846 = vmatpush3.bf16.msra.mxu0 %v5647_v39 }
 0x3d8   :  { %4868 = vmatpush3.bf16.msra.mxu1 %v5648_v41  ;;  %4847 = vmatprep.subr.bf16.mxu0 %v5649_v42 }
 0x3d9   :  { %4869 = vmatprep.subr.bf16.mxu1 %v5650_v43 }
 0x3db   :  { %4848 = vmatpush3.bf16.msra.mxu0 %v5651_v44 }
 0x3dc   :  { %4870 = vmatpush3.bf16.msra.mxu1 %v5652_v45 }
 0x3de   :  { %4128 = vmatmul.mubr.bf16.vlgmr.msra.gmra.mxu0 %v6970_v60 }
 0x3df   :  { %4168 = vmatmul.mubr.bf16.vlgmr.msra.gmra.mxu1 %v6972_v61 }
 0x3fe   :  { %v3883_v49 = vpop.f32.mrf.mxu0  ;;  %v3924_v50 = vpop.f32.mrf.mxu1 }
 0x3ff   :  { %v3884_v51 = vadd.f32 %v3883_v49, %v2665_v47 }
 0x400   :  { %v3885_v52 = vpop.f32.mrf.mxu0  ;;  %v3926_v54 = vpop.f32.mrf.mxu1 }
 0x401   :  { %v3925_v55 = vadd.f32 %v3924_v50, %v3884_v51  ;;  %v3886_v60 = vadd.f32 %v3885_v52, %v2669_v48  ;;  %v2684_v51 = vsub.s32 5, %v6628_v37  ;;  %v2680_v52 = vsub.s32 4, %v6628_v37 }
 0x402   :  { %v3887_v58 = vpop.f32.mrf.mxu0  ;;  %v3928_v61 = vpop.f32.mrf.mxu1 }
 0x403   :  { %v4175_v59 = vsub.f32 0.0, %v3925_v55  ;;  %v3927_v62 = vadd.f32 %v3926_v54, %v3886_v60  ;;  %v2685_v54 = vrot.slane %v7461_v46, %v2684_v51  ;;  %v2681_v55 = vrot.slane %v7461_v46, %v2680_v52 }
 0x404   :  { %v3888_v63 = vpop.f32.mrf.mxu0  ;;  %v3929_v2 = vpop.f32.mrf.mxu1 }
 0x405   :  { %v4182_v3 = vmul.f32 1.442695, %v4175_v59  ;;  %v4176_v4 = vsub.f32 0.0, %v3927_v62  ;;  %v2688_v63 = vsub.s32 6, %v6628_v37 }
 0x407   :  { %5655 = vpow2.f32 %v4182_v3  ;;  %v4184_v38 = vmul.f32 1.442695, %v4176_v4 }
 0x409   :  { %5657 = vpow2.f32 %v4184_v38 }
 0x414   :  { %v5656_v5 = vpop.eup %5655 }
 0x415   :  { %v4196_v40 = vadd.f32 1.0, %v5656_v5  ;;  %v2689_v5 = vrot.slane %v7461_v46, %v2688_v63 }
 0x416   :  { %v5658_v6 = vpop.eup %5657 }
 0x417   :  { %v4197_v7 = vadd.f32 1.0, %v5658_v6  ;;  %5659 = vrcp.f32 %v4196_v40 }
 0x419   :  { %5661 = vrcp.f32 %v4197_v7 }
 0x424   :  { %v5660_v9 = vpop.eup %5659 }
 0x426   :  { %v5662_v11 = vpop.eup %5661 }
 0x427   :  { %v4830_v12 = vpack.c.bf16 %v5662_v11, %v5660_v9 }
 0x429   :  { %v4232_v17 = vrot.slane %v4830_v12, %v7472_v34 }
 0x43e   :  { %v3965_v15 = vpop.f32.mrf.mxu0  ;;  %v4006_v16 = vpop.f32.mrf.mxu1 }
 0x43f   :  { %v3966_v19 = vadd.f32 %v3965_v15, %v2673_v13 }
 0x440   :  { %v3967_v21 = vpop.f32.mrf.mxu0  ;;  %v4008_v22 = vpop.f32.mrf.mxu1 }
 0x441   :  { %v4007_v23 = vadd.f32 %v4006_v16, %v3966_v19  ;;  %v3968_v24 = vadd.f32 %v3967_v21, %v2677_v14 }
 0x442   :  { %v3969_v25 = vpop.f32.mrf.mxu0  ;;  %v4010_v26 = vpop.f32.mrf.mxu1 }
 0x443   :  { %v4177_v27 = vsub.f32 0.0, %v4007_v23  ;;  %v4009_v28 = vadd.f32 %v4008_v22, %v3968_v24 }
 0x444   :  { %v3970_v56 = vpop.f32.mrf.mxu0  ;;  %v4011_v29 = vpop.f32.mrf.mxu1 }
 0x445   :  { %v4186_v57 = vmul.f32 1.442695, %v4177_v27  ;;  %v4178_v53 = vsub.f32 0.0, %v4009_v28 }
 0x447   :  { %5663 = vpow2.f32 %v4186_v57  ;;  %v4188_v0 = vmul.f32 1.442695, %v4178_v53 }
 0x449   :  { %5665 = vpow2.f32 %v4188_v0 }
 0x454   :  { %v5664_v10 = vpop.eup %5663 }
 0x455   :  { %v4198_v1 = vadd.f32 1.0, %v5664_v10 }
 0x456   :  { %v5666_v30 = vpop.eup %5665 }
 0x457   :  { %v4199_v31 = vadd.f32 1.0, %v5666_v30  ;;  %5667 = vrcp.f32 %v4198_v1 }
 0x459   :  { %5669 = vrcp.f32 %v4199_v31 }
 0x464   :  { %v5668_v33 = vpop.eup %5667 }
 0x466   :  { %v5670_v35 = vpop.eup %5669 }
 0x467   :  { %v4831_v36 = vpack.c.bf16 %v5670_v35, %v5668_v33 }
 0x469   :  { %v4239_v8 = vrot.slane %v4831_v36, %v7472_v34 }
 0x46b   :  { %v4240_v39 = vcombine.low %v4232_v17, %v4239_v8  ;;  %v4241_v41 = vcombine.high %v4232_v17, %v4239_v8 }
 0x46d   :  { %4263 = vst [vmem:[#allocation2] sm:$0xff] %v4240_v39  ;;  %4270 = vst [vmem:[#allocation2 + $0xe] sm:$0xff] %v4241_v41 }
 0x47e   :  { %v4047_v42 = vpop.f32.mrf.mxu0 }
 0x47f   :  { %v4088_v43 = vpop.f32.mrf.mxu1  ;;  %v4048_v58 = vadd.f32 %v4047_v42, %v2681_v55 }
 0x480   :  { %v4049_v44 = vpop.f32.mrf.mxu0 }
 0x481   :  { %v4090_v45 = vpop.f32.mrf.mxu1  ;;  %v4050_v60 = vadd.f32 %v4049_v44, %v2685_v54  ;;  %v4089_v59 = vadd.f32 %v4088_v43, %v4048_v58 }
 0x482   :  { %v4051_v47 = vpop.f32.mrf.mxu0 }
 0x483   :  { %v4092_v48 = vpop.f32.mrf.mxu1  ;;  %v4091_v61 = vadd.f32 %v4090_v45, %v4050_v60  ;;  %v4179_v2 = vsub.f32 0.0, %v4089_v59 }
 0x484   :  { %v4052_v49 = vpop.f32.mrf.mxu0 }
 0x485   :  { %v4093_v50 = vpop.f32.mrf.mxu1  ;;  %v4180_v62 = vsub.f32 0.0, %v4091_v61  ;;  %v4190_v6 = vmul.f32 1.442695, %v4179_v2 }
 0x487   :  { %v4192_v4 = vmul.f32 1.442695, %v4180_v62 }
 0x489   :  { %5671 = vpow2.f32 %v4192_v4 }
 0x48a   :  { %5673 = vpow2.f32 %v4190_v6 }
 0x496   :  { %v5672_v22 = vpop.eup %5671 }
 0x497   :  { %v5674_v23 = vpop.eup %5673  ;;  %v4201_v24 = vadd.f32 1.0, %v5672_v22 }
 0x498   :  { %v4200_v46 = vadd.f32 1.0, %v5674_v23 }
 0x49e   :  { %v4849_v3 = vpop.f32.mrf.mxu0 }
 0x49f   :  { %v4871_v38 = vpop.f32.mrf.mxu1 }
 0x4a0   :  { %v4850_v40 = vpop.f32.mrf.mxu0 }
 0x4a1   :  { %v4851_v7 = vadd.f32 %v4850_v40, %v4849_v3  ;;  %v4872_v9 = vpop.f32.mrf.mxu1 }
 0x4a2   :  { %v4852_v11 = vpop.f32.mrf.mxu0  ;;  %v4873_v13 = vadd.f32 %v4872_v9, %v4871_v38 }
 0x4a3   :  { %v4130_v12 = vadd.f32 %v4851_v7, %v2689_v5  ;;  %v4874_v14 = vpop.f32.mrf.mxu1 }
 0x4a4   :  { %v4853_v15 = vpop.f32.mrf.mxu0 }
 0x4a5   :  { %v4170_v16 = vadd.f32 %v4873_v13, %v4130_v12  ;;  %v4875_v19 = vpop.f32.mrf.mxu1 }
 0x4a7   :  { %v4181_v37 = vsub.f32 0.0, %v4170_v16 }
 0x4a9   :  { %v4194_v21 = vmul.f32 1.442695, %v4181_v37 }
 0x4ab   :  { %5675 = vpow2.f32 %v4194_v21 }
 0x4ac   :  { %5677 = vrcp.f32 %v4201_v24 }
 0x4ad   :  { %5679 = vrcp.f32 %v4200_v46 }
 0x4b8   :  { %v5676_v25 = vpop.eup %5675 }
 0x4b9   :  { %v4202_v26 = vadd.f32 1.0, %v5676_v25  ;;  %v5678_v27 = vpop.eup %5677 }
 0x4ba   :  { %v5680_v28 = vpop.eup %5679 }
 0x4bb   :  { %5681 = vrcp.f32 %v4202_v26  ;;  %v4832_v56 = vpack.c.bf16 %v5678_v27, %v5680_v28 }
 0x4bd   :  { %v4249_v53 = vrot.slane %v4832_v56, %v7472_v34 }
 0x4c8   :  { %v5682_v29 = vpop.eup %5681 }
 0x4c9   :  { %v4216_v57 = vpack.c.bf16 %v5682_v29, %v5682_v29 }
 0x4cb   :  { %v4256_v0 = vrot.slane %v4216_v57, %v7472_v34 }
 0x4cd   :  { %v4257_v10 = vcombine.low %v4249_v53, %v4256_v0  ;;  %v4258_v1 = vcombine.high %v4249_v53, %v4256_v0 }
 0x4cf   :  { %4269 = vst.msk [vmem:[#allocation2 + $0x8] sm:$0x3f] %vm4268_vm5, %v4257_v10  ;;  %4271 = vst.msk [vmem:[#allocation2 + $0x16] sm:$0x3f] %vm4268_vm5, %v4258_v1 }
 0x4d0   :  { %4284 = vsyncadd [#allocation3], 224  ;;  %s5729_s8 = smov [#allocation2]  }
 0x4d1   :  { %s4285_s9 = sshll.u32 %s5729_s8, 4  ;;  %s4286_s9 = int_to_ptr.vmem [resolvable:$true] %s4285_s9 }
 0x4d2   :  { %s5683_s18 = scalar_lea.vmem %s4286_s9, 224  ;;  %s5687_s19 = scalar_lea.vmem %s4286_s9, 448 }
 0x4d3   :  { %p5684_p0 = scmp.ne.s32.totalorder %s4286_s9, %s5683_s18  ;;  %p5688_p1 = scmp.lt.s32.totalorder %s4286_s9, %s4286_s9 }
 0x4d4   :  { %p5689_p2 = scmp.lt.s32.totalorder %s5687_s19, %s5683_s18 }
 0x4d6   :  { %p5690_p3 = por %p5689_p2, %p5688_p1 }
 0x4d8   :  { %p5691_p4 = pnand %p5690_p3, %p5684_p0 }
 0x4da   :  { %5694 = shalt.err (!%p5691_p4)
}
 0x4db   :  { %s5730_s20 = smov 224   ;;  %s5731_s6 = smov 14  }
 0x4dc   :  { %4291 = dma.vmem_to_hbm [thread:$0]  %s4286_s9, 224, %s7500_s10, [#allocation3], %s5730_s20, %s5730_s20, %s5731_s6  }
 0x4dd   :  { %4296 = vsyncadd [#allocation5], 128  ;;  %s5732_s7 = smov [#allocation4]  }
 0x4de   :  { %s4297_s4 = sshll.u32 %s5732_s7, 4  ;;  %s4298_s4 = int_to_ptr.vmem [resolvable:$true] %s4297_s4 }
 0x4df   :  { %s5703_s21 = scalar_lea.vmem %s4298_s4, 128  ;;  %s5707_s0 = scalar_lea.vmem %s4298_s4, 256 }
 0x4e0   :  { %p5704_p5 = scmp.ne.s32.totalorder %s4298_s4, %s5703_s21  ;;  %p5708_p6 = scmp.lt.s32.totalorder %s4298_s4, %s4298_s4 }
 0x4e1   :  { %p5709_p7 = scmp.lt.s32.totalorder %s5707_s0, %s5703_s21 }
 0x4e3   :  { %p5710_p8 = por %p5709_p7, %p5708_p6 }
 0x4e5   :  { %p5711_p9 = pnand %p5710_p8, %p5704_p5 }
 0x4e7   :  { %5714 = shalt.err (!%p5711_p9)
}
 0x4e8   :  { %s5733_s22 = smov 128   ;;  %s5734_s23 = smov 8  }
 0x4e9   :  { %4303 = dma.vmem_to_hbm [thread:$0]  %s4298_s4, 128, %s7501_s11, [#allocation5], %s5733_s22, %s5733_s22, %s5734_s23  }
 0x4ea   :  { %5723 = dma.done.wait [#allocation3], 448  }
 0x4eb   :  { %5724 = vsyncadd [#allocation3], 4294966848 }
 0x4ec   :  { %5725 = dma.done.wait [#allocation5], 256  }
 0x4ed   :  { %5726 = vsyncadd [#allocation5], 4294967040 }
 0x4ee   :  { %4310 = vsyncpa [#allocation3], 1 }
 0x4ef   :  { %4311 = vsyncpa [#allocation5], 1 }

</bundles_post_ra>
